<compile_context>
chip_gen: v7x
topology: tpu7x:2x2x1
jax: 0.10.0
libtpu: 0.0.40
codegen_flags: <defaults>
</compile_context>

<pallas_src>
import numpy as np
import jax
import jax.numpy as jnp
from jax import lax
from jax.experimental import pallas as pl
from jax.experimental.pallas import tpu as pltpu
from jax.scipy.special import erf as _erf_exact

_SQRT_HALF = 0.7071067811865476


# ---------------------------------------------------------------------------
# tiling policy
# ---------------------------------------------------------------------------
def _lane_tile(n_rows_live, s, dtype_bytes=4, target_bytes=2 << 20, min_steps=1):
    """Lane-tile (last-dim) size for blocks with `n_rows_live` total live rows.

    Tile is a multiple of 128 lanes (or the full dim), bounded by a ~2 MiB
    per-step byte budget (keeps double-buffered VMEM far below v7x's 64 MiB),
    and optionally forced to give >= `min_steps` grid steps so a 'parallel'
    grid axis can feed both v7x TensorCores.  Non-divisible tails rely on
    Pallas' automatic edge masking (no whole-array fallback block).
    """
    if s <= 128:
        return s
    budget = max(128, (target_bytes // max(1, n_rows_live * dtype_bytes)) // 128 * 128)
    want = s if min_steps <= 1 else -(-s // min_steps)          # ceil(s / min_steps)
    ts = min(budget, ((want + 127) // 128) * 128)
    return s if ts >= s else ts


# ---------------------------------------------------------------------------
# in-kernel math helpers
# ---------------------------------------------------------------------------
def _erf_approx(z):
    # Abramowitz & Stegun 7.1.26 (|err| <= 1.5e-7).  The rational term's
    # reciprocal runs on the EUP (approx=True) + one Newton step, keeping the
    # busiest VALU slot free while preserving ~f32 accuracy.
    s = jnp.where(z < 0.0, -1.0, 1.0)
    a = jnp.abs(z)
    y = 1.0 + 0.3275911 * a
    r = pl.reciprocal(y, approx=True)
    t = r * (2.0 - y * r)                       # one Newton refinement
    poly = t * (0.254829592 + t * (-0.284496736 + t * (1.421413741
             + t * (-1.453152027 + t * 1.061405429))))
    return s * (1.0 - poly * jnp.exp(-(a * a)))


# ---------------------------------------------------------------------------
# Pallas kernels
# ---------------------------------------------------------------------------
def _make_spectral_mix_kernel(b, c_in, c_out):
    """Complex per-mode channel mix: out[b,o,m] = sum_i x[b,i,m] * w[i,o,m].

    Layout: x rows = b*C_in + i, w rows = i*C_out + o, out rows = b*C_out + o,
    modes flattened on the lane axis.  Gauss 3-multiply complex product.
    """
    def kernel(xr_ref, xi_ref, wr_ref, wi_ref, or_ref, oi_ref):
        for bi in range(b):
            acc_r = None
            acc_i = None
            for i in range(c_in):
                row = bi * c_in + i
                a = xr_ref[pl.ds(row, 1), :]                 # (1, tk)
                bb = xi_ref[pl.ds(row, 1), :]                # (1, tk)
                c = wr_ref[pl.ds(i * c_out, c_out), :]       # (c_out, tk)
                d = wi_ref[pl.ds(i * c_out, c_out), :]       # (c_out, tk)
                t1 = c * (a + bb)                            # Gauss 3-mult product
                pr = t1 - bb * (c + d)                       # = a*c - bb*d
                pi = t1 + a * (d - c)                        # = a*d + bb*c
                acc_r = pr if acc_r is None else acc_r + pr
                acc_i = pi if acc_i is None else acc_i + pi
            or_ref[pl.ds(bi * c_out, c_out), :] = acc_r
            oi_ref[pl.ds(bi * c_out, c_out), :] = acc_i
    return kernel


def _make_bias_act_kernel(apply_gelu):
    def kernel(x_ref, b_ref, o_ref):
        x = x_ref[...] + b_ref[...]                          # per-row (channel) bias
        if apply_gelu:
            x = 0.5 * x * (1.0 + _erf_approx(x * _SQRT_HALF))
        o_ref[...] = x.astype(o_ref.dtype)
    return kernel


# ---------------------------------------------------------------------------
# Pallas wrappers
# ---------------------------------------------------------------------------
def spectral_mode_mix(xcr, xci, wr, wi, b, c_in, c_out):
    """xcr/xci: (4, B*C_in, M)  wr/wi: (4, C_in*C_out, M) -> (out_r, out_i) each
    (4, B*C_out, M)."""
    _, bc_in, m = xcr.shape
    cw = c_in * c_out
    bc_out = b * c_out
    rows_live = 2 * (bc_in + cw + bc_out)                    # all live block rows
    tk = _lane_tile(rows_live, m, target_bytes=2 << 20, min_steps=1)
    nk = pl.cdiv(m, tk)

    flops = int(4 * b * c_in * c_out * m * 8)
    bytes_acc = int((2 * 4 * bc_in * m + 2 * 4 * cw * m + 2 * 4 * bc_out * m) * 4)
    out_sds = jax.ShapeDtypeStruct((4, bc_out, m), jnp.float32)

    return pl.pallas_call(
        _make_spectral_mix_kernel(b, c_in, c_out),
        out_shape=(out_sds, out_sds),
        grid=(4, nk),
        in_specs=[
            pl.BlockSpec((None, bc_in, tk), lambda q, t: (q, 0, t)),
            pl.BlockSpec((None, bc_in, tk), lambda q, t: (q, 0, t)),
            pl.BlockSpec((None, cw, tk), lambda q, t: (q, 0, t)),
            pl.BlockSpec((None, cw, tk), lambda q, t: (q, 0, t)),
        ],
        out_specs=(
            pl.BlockSpec((None, bc_out, tk), lambda q, t: (q, 0, t)),
            pl.BlockSpec((None, bc_out, tk), lambda q, t: (q, 0, t)),
        ),
        compiler_params=pltpu.CompilerParams(
            dimension_semantics=("parallel", "parallel")),
        cost_estimate=pl.CostEstimate(flops=flops, transcendentals=0,
                                      bytes_accessed=bytes_acc),
    )(xcr.astype(jnp.float32), xci.astype(jnp.float32),
      wr.astype(jnp.float32), wi.astype(jnp.float32))


def fused_bias_act(x2d, bias_rows, apply_gelu=True):
    """out = gelu(x + bias) on a lane-dense (B*C_out, S) layout."""
    r, s = x2d.shape
    ts = _lane_tile(2 * r, s, target_bytes=2 << 20, min_steps=2)  # >=2 steps for v7x
    grid = (pl.cdiv(s, ts),)
    n = r * s
    flops = int(n * (20 if apply_gelu else 1))
    trans = int(n if apply_gelu else 0)
    bytes_acc = int((2 * n + r) * 4)

    return pl.pallas_call(
        _make_bias_act_kernel(apply_gelu),
        out_shape=jax.ShapeDtypeStruct((r, s), jnp.float32),
        grid=grid,
        in_specs=[
            pl.BlockSpec((r, ts), lambda t: (0, t)),
            pl.BlockSpec((r, 1), lambda t: (0, 0)),
        ],
        out_specs=pl.BlockSpec((r, ts), lambda t: (0, t)),
        compiler_params=pltpu.CompilerParams(dimension_semantics=("parallel",)),
        cost_estimate=pl.CostEstimate(flops=flops, transcendentals=trans,
                                      bytes_accessed=bytes_acc),
    )(x2d.astype(jnp.float32), bias_rows.astype(jnp.float32))


# ---------------------------------------------------------------------------
# spectral-weight / spectrum assembly (small, plain JAX)
# ---------------------------------------------------------------------------
def _build_combined_weights(spec_wr, spec_wi, conv_w, m, k, kk, factor):
    """Fold branch-1 per-mode complex weights and branch-2's low-pass-masked,
    norm-reconciled 1x1x1-conv weights into one complex weight on the union
    corner blocks of size (K1, K2, K3)."""
    m1, m2, m3 = m
    k1, k2, k3 = k
    K1, K2, K3 = kk
    c_in, c_out = spec_wr.shape[1], spec_wr.shape[2]
    wr = jnp.zeros((4, c_in, c_out, K1, K2, K3), jnp.float32)
    wi = jnp.zeros_like(wr)

    def corner_idx(q, n1, n2, n3):
        x0 = 0 if q in (0, 2) else K1 - n1          # corners 1,3 sit at the -n1: end
        y0 = 0 if q in (0, 1) else K2 - n2          # corners 2,3 sit at the -n2: end
        return (q, slice(None), slice(None),
                slice(x0, x0 + n1), slice(y0, y0 + n2), slice(0, n3))

    for q in range(4):                              # branch 1: weights1..4
        wr = wr.at[corner_idx(q, m1, m2, m3)].set(spec_wr[q].astype(jnp.float32))
        wi = wi.at[corner_idx(q, m1, m2, m3)].set(spec_wi[q].astype(jnp.float32))

    cw = jnp.broadcast_to(
        (factor * conv_w.T.astype(jnp.float32))[:, :, None, None, None],
        (c_in, c_out, k1, k2, k3))
    for q in range(4):                              # branch 2: conv in spectral space
        wr = wr.at[corner_idx(q, k1, k2, k3)].add(cw)

    mm = K1 * K2 * K3
    return wr.reshape(4, c_in * c_out, mm), wi.reshape(4, c_in * c_out, mm)


def _assemble_spectrum(out_c, dim1, dim2, dim3, K1, K2, K3):
    """Place the 4 mixed corner blocks into the full output spectrum using
    concat/pad (XLA-fusable) instead of full-buffer complex .at[].set copies."""
    b, c_out = out_c.shape[1], out_c.shape[2]
    zy = jnp.zeros((b, c_out, K1, dim2 - 2 * K2, K3), out_c.dtype)
    top = jnp.concatenate([out_c[0], zy, out_c[2]], axis=3)
    bot = jnp.concatenate([out_c[1], zy, out_c[3]], axis=3)
    zx = jnp.zeros((b, c_out, dim1 - 2 * K1, dim2, K3), out_c.dtype)
    full = jnp.concatenate([top, zx, bot], axis=2)
    pad_z = dim3 // 2 + 1 - K3
    return jnp.pad(full, ((0, 0), (0, 0), (0, 0), (0, 0), (0, pad_z)))


# ---------------------------------------------------------------------------
# OperatorBlock_3D forward
# ---------------------------------------------------------------------------
def operator_block_3d(x, params, dim1, dim2, dim3, normalize=False, non_lin=True):
    """x: (B, C_in, D1, D2, D3) float32 -> (B, C_out, dim1, dim2, dim3)."""
    m1, m2, m3 = params["modes"]
    b, c_in, d1, d2, d3 = x.shape
    c_out = params["conv_w"].shape[0]

    if (d1, d2, d3) != (dim1, dim2, dim3):
        # TODO(synk): resolution-changing path (input grid != output grid) keeps the
        # unfused two-FFT-pair formulation in plain JAX; only the equal-grid path
        # below is spectrally fused and Pallas-accelerated.
        return reference_forward(x, params["spec_wr"], params["spec_wi"],
                                 params["conv_w"], params["conv_b"],
                                 dim1, dim2, dim3, m1, m2, m3,
                                 normalize=normalize, non_lin=non_lin)

    k1, k2, k3 = dim1 // 2, dim2 // 2, dim3 // 2          # pointwise_op low-pass mask
    K1, K2, K3 = max(m1, k1), max(m2, k2), max(m3, k3)    # union corner block
    mm = K1 * K2 * K3

    # One forward rFFT feeds both branches.  Branch-2's default 'backward'
    # rfftn/irfftn pair differs from branch-1's 'forward' pair only by a global
    # N_in/N_out factor, which is 1 on the equal-grid path.
    # TODO(synk): rfftn/irfftn have no Pallas TPU equivalent; they remain XLA FFT ops.
    x_ft = jnp.fft.rfftn(x, axes=(-3, -2, -1), norm="forward")
    corners = jnp.stack(
        [x_ft[:, :, :K1, :K2, :K3],
         x_ft[:, :, -K1:, :K2, :K3],
         x_ft[:, :, :K1, -K2:, :K3],
         x_ft[:, :, -K1:, -K2:, :K3]], axis=0)            # (4, B, C_in, K1, K2, K3)
    xcr = jnp.real(corners).reshape(4, b * c_in, mm)
    xci = jnp.imag(corners).reshape(4, b * c_in, mm)

    wr, wi = _build_combined_weights(params["spec_wr"], params["spec_wi"],
                                     params["conv_w"], (m1, m2, m3),
                                     (k1, k2, k3), (K1, K2, K3), factor=1.0)

    out_r, out_i = spectral_mode_mix(xcr, xci, wr, wi, b, c_in, c_out)
    out_c = lax.complex(out_r, out_i).reshape(4, b, c_out, K1, K2, K3)

    out_ft = _assemble_spectrum(out_c, dim1, dim2, dim3, K1, K2, K3)
    xt = jnp.fft.irfftn(out_ft, s=(dim1, dim2, dim3), axes=(-3, -2, -1),
                        norm="forward")                   # single inverse FFT

    # Branch-2's bias is DC-only, survives the low-pass unchanged, and the
    # align_corners trilinear resize is an exact identity here -> add it
    # per output channel in the fused epilogue.
    s_out = dim1 * dim2 * dim3
    xt2 = xt.reshape(b * c_out, s_out).astype(jnp.float32)
    bias_rows = jnp.tile(params["conv_b"].astype(jnp.float32), b).reshape(b * c_out, 1)

    if normalize:
        # TODO(synk): Normalize=True (InstanceNorm3d, non-default) is kept in plain
        # JAX and not fused into the Pallas epilogue.
        s = xt2 + bias_rows
        mean = jnp.mean(s, axis=-1, keepdims=True)
        var = jnp.var(s, axis=-1, keepdims=True)
        s = (s - mean) * lax.rsqrt(var + 1e-5)            # affine init: weight=1, bias=0
        out = 0.5 * s * (1.0 + _erf_exact(s * _SQRT_HALF)) if non_lin else s
    else:
        out = fused_bias_act(xt2, bias_rows, apply_gelu=non_lin)
    return out.reshape(b, c_out, dim1, dim2, dim3)


# ---------------------------------------------------------------------------
# Pure-JAX reference (literal mirror of the PyTorch module, full f32 precision)
# ---------------------------------------------------------------------------
def reference_forward(x, spec_wr, spec_wi, conv_w, conv_b,
                      dim1, dim2, dim3, m1, m2, m3,
                      normalize=False, non_lin=True):
    b = x.shape[0]
    c_out = conv_w.shape[0]
    w_c = lax.complex(spec_wr, spec_wi)                   # (4, C_in, C_out, m1, m2, m3)

    def cmul(inp, wt):
        return jnp.einsum("bixyz,ioxyz->boxyz", inp, wt, precision="highest")

    x_ft = jnp.fft.rfftn(x, axes=(-3, -2, -1), norm="forward")
    out_ft = jnp.zeros((b, c_out, dim1, dim2, dim3 // 2 + 1), dtype=jnp.complex64)
    out_ft = out_ft.at[:, :, :m1, :m2, :m3].set(cmul(x_ft[:, :, :m1, :m2, :m3], w_c[0]))
    out_ft = out_ft.at[:, :, -m1:, :m2, :m3].set(cmul(x_ft[:, :, -m1:, :m2, :m3], w_c[1]))
    out_ft = out_ft.at[:, :, :m1, -m2:, :m3].set(cmul(x_ft[:, :, :m1, -m2:, :m3], w_c[2]))
    out_ft = out_ft.at[:, :, -m1:, -m2:, :m3].set(cmul(x_ft[:, :, -m1:, -m2:, :m3], w_c[3]))
    x1 = jnp.fft.irfftn(out_ft, s=(dim1, dim2, dim3), axes=(-3, -2, -1), norm="forward")

    y = jnp.einsum("oi,bixyz->boxyz", conv_w, x, precision="highest") \
        + conv_b[None, :, None, None, None]
    ft = jnp.fft.rfftn(y, axes=(-3, -2, -1))              # torch default norm='backward'
    k1, k2, k3 = dim1 // 2, dim2 // 2, dim3 // 2
    ft_u = jnp.zeros_like(ft)
    ft_u = ft_u.at[:, :, :k1, :k2, :k3].set(ft[:, :, :k1, :k2, :k3])
    ft_u = ft_u.at[:, :, -k1:, :k2, :k3].set(ft[:, :, -k1:, :k2, :k3])
    ft_u = ft_u.at[:, :, :k1, -k2:, :k3].set(ft[:, :, :k1, -k2:, :k3])
    ft_u = ft_u.at[:, :, -k1:, -k2:, :k3].set(ft[:, :, -k1:, -k2:, :k3])
    x2 = jnp.fft.irfftn(ft_u, s=(dim1, dim2, dim3), axes=(-3, -2, -1))
    # F.interpolate(..., mode='trilinear', align_corners=True) is an exact identity
    # here since irfftn already produced the (dim1, dim2, dim3) grid.

    out = x1 + x2
    if normalize:
        mean = jnp.mean(out, axis=(-3, -2, -1), keepdims=True)
        var = jnp.var(out, axis=(-3, -2, -1), keepdims=True)
        out = (out - mean) * lax.rsqrt(var + 1e-5)
    if non_lin:
        out = 0.5 * out * (1.0 + _erf_exact(out * _SQRT_HALF))
    return out


if __name__ == "__main__":
    B, C_IN, C_OUT = 2, 4, 8
    D1, D2, D3 = 16, 16, 8              # input grid
    DIM1, DIM2, DIM3 = 16, 16, 8        # output grid (dim1, dim2, dim3)
    M1, M2, M3 = 8, 8, 5                # Fourier modes (<= dim/2, dim3//2+1)

    key = jax.random.PRNGKey(0)
    kx, kwr, kwi, kcw, kcb = jax.random.split(key, 5)

    x = jax.random.normal(kx, (B, C_IN, D1, D2, D3), dtype=jnp.float32)

    scale = (1.0 / (2.0 * C_IN)) ** 0.5          # SpectralConv3d_Uno init scale
    spec_wr = scale * jax.random.normal(
        kwr, (4, C_IN, C_OUT, M1, M2, M3), dtype=jnp.float32)
    spec_wi = scale * jax.random.normal(
        kwi, (4, C_IN, C_OUT, M1, M2, M3), dtype=jnp.float32)

    bound = 1.0 / np.sqrt(C_IN)                  # nn.Conv3d(C_IN, C_OUT, 1) init bound
    conv_w = jax.random.uniform(kcw, (C_OUT, C_IN), minval=-bound, maxval=bound,
                                dtype=jnp.float32)
    conv_b = jax.random.uniform(kcb, (C_OUT,), minval=-bound, maxval=bound,
                                dtype=jnp.float32)

    params = {
        "spec_wr": spec_wr,
        "spec_wi": spec_wi,
        "conv_w": conv_w,
        "conv_b": conv_b,
        "modes": (M1, M2, M3),
    }

    fwd = jax.jit(lambda xx: operator_block_3d(xx, params, DIM1, DIM2, DIM3))
    out = jax.block_until_ready(fwd(x))
    assert out.shape == (B, C_OUT, DIM1, DIM2, DIM3)

    ref = reference_forward(x, spec_wr, spec_wi, conv_w, conv_b,
                            DIM1, DIM2, DIM3, M1, M2, M3)
    np.testing.assert_allclose(np.asarray(out), np.asarray(ref),
                               rtol=2e-4, atol=2e-4)
    print("KERNEL_OK")
</pallas_src>

<mosaic_0001>
module attributes {stable_mosaic.version = 11 : i64} {
  func.func @kernel(%arg0: i32, %arg1: i32, %arg2: memref<1x8x320xf32, #tpu.memory_space<vmem>>, %arg3: memref<1x8x320xf32, #tpu.memory_space<vmem>>, %arg4: memref<1x32x320xf32, #tpu.memory_space<vmem>>, %arg5: memref<1x32x320xf32, #tpu.memory_space<vmem>>, %arg6: memref<1x16x320xf32, #tpu.memory_space<vmem>>, %arg7: memref<1x16x320xf32, #tpu.memory_space<vmem>>) attributes {dimension_semantics = [#tpu.dimension_semantics<parallel>, #tpu.dimension_semantics<parallel>], iteration_bounds = array<i64: 4, 1>, scalar_prefetch = 0 : i64, scratch_operands = 0 : i64, tpu.core_type = #tpu.core_type<tc>, window_params = [{transform_indices = @transform_0, window_bounds = array<i64: 1, 8, 320>}, {transform_indices = @transform_1, window_bounds = array<i64: 1, 8, 320>}, {transform_indices = @transform_2, window_bounds = array<i64: 1, 32, 320>}, {transform_indices = @transform_3, window_bounds = array<i64: 1, 32, 320>}, {transform_indices = @transform_4, window_bounds = array<i64: 1, 16, 320>}, {transform_indices = @transform_5, window_bounds = array<i64: 1, 16, 320>}]} {
    %c0 = arith.constant 0 : index
    %c0_0 = arith.constant 0 : index
    %c0_1 = arith.constant 0 : index
    %0 = vector.load %arg2[%c0, %c0_0, %c0_1] : memref<1x8x320xf32, #tpu.memory_space<vmem>>, vector<1x1x320xf32>
    %1 = vector.shape_cast %0 : vector<1x1x320xf32> to vector<1x320xf32>
    %c0_2 = arith.constant 0 : index
    %c0_3 = arith.constant 0 : index
    %c0_4 = arith.constant 0 : index
    %2 = vector.load %arg3[%c0_2, %c0_3, %c0_4] : memref<1x8x320xf32, #tpu.memory_space<vmem>>, vector<1x1x320xf32>
    %3 = vector.shape_cast %2 : vector<1x1x320xf32> to vector<1x320xf32>
    %c0_5 = arith.constant 0 : index
    %c0_6 = arith.constant 0 : index
    %c0_7 = arith.constant 0 : index
    %4 = vector.load %arg4[%c0_5, %c0_6, %c0_7] : memref<1x32x320xf32, #tpu.memory_space<vmem>>, vector<1x8x320xf32>
    %5 = vector.shape_cast %4 : vector<1x8x320xf32> to vector<8x320xf32>
    %c0_8 = arith.constant 0 : index
    %c0_9 = arith.constant 0 : index
    %c0_10 = arith.constant 0 : index
    %6 = vector.load %arg5[%c0_8, %c0_9, %c0_10] : memref<1x32x320xf32, #tpu.memory_space<vmem>>, vector<1x8x320xf32>
    %7 = vector.shape_cast %6 : vector<1x8x320xf32> to vector<8x320xf32>
    %8 = arith.addf %1, %3 : vector<1x320xf32>
    %9 = vector.broadcast %8 : vector<1x320xf32> to vector<8x320xf32>
    %10 = arith.mulf %5, %9 : vector<8x320xf32>
    %11 = arith.addf %5, %7 : vector<8x320xf32>
    %12 = vector.broadcast %3 : vector<1x320xf32> to vector<8x320xf32>
    %13 = arith.mulf %12, %11 : vector<8x320xf32>
    %14 = arith.subf %10, %13 : vector<8x320xf32>
    %15 = arith.subf %7, %5 : vector<8x320xf32>
    %16 = vector.broadcast %1 : vector<1x320xf32> to vector<8x320xf32>
    %17 = arith.mulf %16, %15 : vector<8x320xf32>
    %18 = arith.addf %10, %17 : vector<8x320xf32>
    %c0_11 = arith.constant 0 : index
    %c1 = arith.constant 1 : index
    %c0_12 = arith.constant 0 : index
    %19 = vector.load %arg2[%c0_11, %c1, %c0_12] : memref<1x8x320xf32, #tpu.memory_space<vmem>>, vector<1x1x320xf32>
    %20 = vector.shape_cast %19 : vector<1x1x320xf32> to vector<1x320xf32>
    %c0_13 = arith.constant 0 : index
    %c1_14 = arith.constant 1 : index
    %c0_15 = arith.constant 0 : index
    %21 = vector.load %arg3[%c0_13, %c1_14, %c0_15] : memref<1x8x320xf32, #tpu.memory_space<vmem>>, vector<1x1x320xf32>
    %22 = vector.shape_cast %21 : vector<1x1x320xf32> to vector<1x320xf32>
    %c0_16 = arith.constant 0 : index
    %c8 = arith.constant 8 : index
    %c0_17 = arith.constant 0 : index
    %23 = vector.load %arg4[%c0_16, %c8, %c0_17] : memref<1x32x320xf32, #tpu.memory_space<vmem>>, vector<1x8x320xf32>
    %24 = vector.shape_cast %23 : vector<1x8x320xf32> to vector<8x320xf32>
    %c0_18 = arith.constant 0 : index
    %c8_19 = arith.constant 8 : index
    %c0_20 = arith.constant 0 : index
    %25 = vector.load %arg5[%c0_18, %c8_19, %c0_20] : memref<1x32x320xf32, #tpu.memory_space<vmem>>, vector<1x8x320xf32>
    %26 = vector.shape_cast %25 : vector<1x8x320xf32> to vector<8x320xf32>
    %27 = arith.addf %20, %22 : vector<1x320xf32>
    %28 = vector.broadcast %27 : vector<1x320xf32> to vector<8x320xf32>
    %29 = arith.mulf %24, %28 : vector<8x320xf32>
    %30 = arith.addf %24, %26 : vector<8x320xf32>
    %31 = vector.broadcast %22 : vector<1x320xf32> to vector<8x320xf32>
    %32 = arith.mulf %31, %30 : vector<8x320xf32>
    %33 = arith.subf %29, %32 : vector<8x320xf32>
    %34 = arith.subf %26, %24 : vector<8x320xf32>
    %35 = vector.broadcast %20 : vector<1x320xf32> to vector<8x320xf32>
    %36 = arith.mulf %35, %34 : vector<8x320xf32>
    %37 = arith.addf %29, %36 : vector<8x320xf32>
    %38 = arith.addf %14, %33 : vector<8x320xf32>
    %39 = arith.addf %18, %37 : vector<8x320xf32>
    %c0_21 = arith.constant 0 : index
    %c2 = arith.constant 2 : index
    %c0_22 = arith.constant 0 : index
    %40 = vector.load %arg2[%c0_21, %c2, %c0_22] : memref<1x8x320xf32, #tpu.memory_space<vmem>>, vector<1x1x320xf32>
    %41 = vector.shape_cast %40 : vector<1x1x320xf32> to vector<1x320xf32>
    %c0_23 = arith.constant 0 : index
    %c2_24 = arith.constant 2 : index
    %c0_25 = arith.constant 0 : index
    %42 = vector.load %arg3[%c0_23, %c2_24, %c0_25] : memref<1x8x320xf32, #tpu.memory_space<vmem>>, vector<1x1x320xf32>
    %43 = vector.shape_cast %42 : vector<1x1x320xf32> to vector<1x320xf32>
    %c0_26 = arith.constant 0 : index
    %c16 = arith.constant 16 : index
    %c0_27 = arith.constant 0 : index
    %44 = vector.load %arg4[%c0_26, %c16, %c0_27] : memref<1x32x320xf32, #tpu.memory_space<vmem>>, vector<1x8x320xf32>
    %45 = vector.shape_cast %44 : vector<1x8x320xf32> to vector<8x320xf32>
    %c0_28 = arith.constant 0 : index
    %c16_29 = arith.constant 16 : index
    %c0_30 = arith.constant 0 : index
    %46 = vector.load %arg5[%c0_28, %c16_29, %c0_30] : memref<1x32x320xf32, #tpu.memory_space<vmem>>, vector<1x8x320xf32>
    %47 = vector.shape_cast %46 : vector<1x8x320xf32> to vector<8x320xf32>
    %48 = arith.addf %41, %43 : vector<1x320xf32>
    %49 = vector.broadcast %48 : vector<1x320xf32> to vector<8x320xf32>
    %50 = arith.mulf %45, %49 : vector<8x320xf32>
    %51 = arith.addf %45, %47 : vector<8x320xf32>
    %52 = vector.broadcast %43 : vector<1x320xf32> to vector<8x320xf32>
    %53 = arith.mulf %52, %51 : vector<8x320xf32>
    %54 = arith.subf %50, %53 : vector<8x320xf32>
    %55 = arith.subf %47, %45 : vector<8x320xf32>
    %56 = vector.broadcast %41 : vector<1x320xf32> to vector<8x320xf32>
    %57 = arith.mulf %56, %55 : vector<8x320xf32>
    %58 = arith.addf %50, %57 : vector<8x320xf32>
    %59 = arith.addf %38, %54 : vector<8x320xf32>
    %60 = arith.addf %39, %58 : vector<8x320xf32>
    %c0_31 = arith.constant 0 : index
    %c3 = arith.constant 3 : index
    %c0_32 = arith.constant 0 : index
    %61 = vector.load %arg2[%c0_31, %c3, %c0_32] : memref<1x8x320xf32, #tpu.memory_space<vmem>>, vector<1x1x320xf32>
    %62 = vector.shape_cast %61 : vector<1x1x320xf32> to vector<1x320xf32>
    %c0_33 = arith.constant 0 : index
    %c3_34 = arith.constant 3 : index
    %c0_35 = arith.constant 0 : index
    %63 = vector.load %arg3[%c0_33, %c3_34, %c0_35] : memref<1x8x320xf32, #tpu.memory_space<vmem>>, vector<1x1x320xf32>
    %64 = vector.shape_cast %63 : vector<1x1x320xf32> to vector<1x320xf32>
    %c0_36 = arith.constant 0 : index
    %c24 = arith.constant 24 : index
    %c0_37 = arith.constant 0 : index
    %65 = vector.load %arg4[%c0_36, %c24, %c0_37] : memref<1x32x320xf32, #tpu.memory_space<vmem>>, vector<1x8x320xf32>
    %66 = vector.shape_cast %65 : vector<1x8x320xf32> to vector<8x320xf32>
    %c0_38 = arith.constant 0 : index
    %c24_39 = arith.constant 24 : index
    %c0_40 = arith.constant 0 : index
    %67 = vector.load %arg5[%c0_38, %c24_39, %c0_40] : memref<1x32x320xf32, #tpu.memory_space<vmem>>, vector<1x8x320xf32>
    %68 = vector.shape_cast %67 : vector<1x8x320xf32> to vector<8x320xf32>
    %69 = arith.addf %62, %64 : vector<1x320xf32>
    %70 = vector.broadcast %69 : vector<1x320xf32> to vector<8x320xf32>
    %71 = arith.mulf %66, %70 : vector<8x320xf32>
    %72 = arith.addf %66, %68 : vector<8x320xf32>
    %73 = vector.broadcast %64 : vector<1x320xf32> to vector<8x320xf32>
    %74 = arith.mulf %73, %72 : vector<8x320xf32>
    %75 = arith.subf %71, %74 : vector<8x320xf32>
    %76 = arith.subf %68, %66 : vector<8x320xf32>
    %77 = vector.broadcast %62 : vector<1x320xf32> to vector<8x320xf32>
    %78 = arith.mulf %77, %76 : vector<8x320xf32>
    %79 = arith.addf %71, %78 : vector<8x320xf32>
    %80 = arith.addf %59, %75 : vector<8x320xf32>
    %81 = arith.addf %60, %79 : vector<8x320xf32>
    %c0_41 = arith.constant 0 : index
    %c0_42 = arith.constant 0 : index
    %c0_43 = arith.constant 0 : index
    %82 = vector.load %arg6[%c0_41, %c0_42, %c0_43] : memref<1x16x320xf32, #tpu.memory_space<vmem>>, vector<1x8x320xf32>
    %83 = vector.shape_cast %82 : vector<1x8x320xf32> to vector<8x320xf32>
    %84 = vector.shape_cast %80 : vector<8x320xf32> to vector<1x8x320xf32>
    tpu.vector_store %arg6[%c0_41, %c0_42, %c0_43], %84 {strides = array<i32>} : memref<1x16x320xf32, #tpu.memory_space<vmem>>, vector<1x8x320xf32>,
    %c0_44 = arith.constant 0 : index
    %c0_45 = arith.constant 0 : index
    %c0_46 = arith.constant 0 : index
    %85 = vector.load %arg7[%c0_44, %c0_45, %c0_46] : memref<1x16x320xf32, #tpu.memory_space<vmem>>, vector<1x8x320xf32>
    %86 = vector.shape_cast %85 : vector<1x8x320xf32> to vector<8x320xf32>
    %87 = vector.shape_cast %81 : vector<8x320xf32> to vector<1x8x320xf32>
    tpu.vector_store %arg7[%c0_44, %c0_45, %c0_46], %87 {strides = array<i32>} : memref<1x16x320xf32, #tpu.memory_space<vmem>>, vector<1x8x320xf32>,
    %c0_47 = arith.constant 0 : index
    %c4 = arith.constant 4 : index
    %c0_48 = arith.constant 0 : index
    %88 = vector.load %arg2[%c0_47, %c4, %c0_48] : memref<1x8x320xf32, #tpu.memory_space<vmem>>, vector<1x1x320xf32>
    %89 = vector.shape_cast %88 : vector<1x1x320xf32> to vector<1x320xf32>
    %c0_49 = arith.constant 0 : index
    %c4_50 = arith.constant 4 : index
    %c0_51 = arith.constant 0 : index
    %90 = vector.load %arg3[%c0_49, %c4_50, %c0_51] : memref<1x8x320xf32, #tpu.memory_space<vmem>>, vector<1x1x320xf32>
    %91 = vector.shape_cast %90 : vector<1x1x320xf32> to vector<1x320xf32>
    %c0_52 = arith.constant 0 : index
    %c0_53 = arith.constant 0 : index
    %c0_54 = arith.constant 0 : index
    %92 = vector.load %arg4[%c0_52, %c0_53, %c0_54] : memref<1x32x320xf32, #tpu.memory_space<vmem>>, vector<1x8x320xf32>
    %93 = vector.shape_cast %92 : vector<1x8x320xf32> to vector<8x320xf32>
    %c0_55 = arith.constant 0 : index
    %c0_56 = arith.constant 0 : index
    %c0_57 = arith.constant 0 : index
    %94 = vector.load %arg5[%c0_55, %c0_56, %c0_57] : memref<1x32x320xf32, #tpu.memory_space<vmem>>, vector<1x8x320xf32>
    %95 = vector.shape_cast %94 : vector<1x8x320xf32> to vector<8x320xf32>
    %96 = arith.addf %89, %91 : vector<1x320xf32>
    %97 = vector.broadcast %96 : vector<1x320xf32> to vector<8x320xf32>
    %98 = arith.mulf %93, %97 : vector<8x320xf32>
    %99 = arith.addf %93, %95 : vector<8x320xf32>
    %100 = vector.broadcast %91 : vector<1x320xf32> to vector<8x320xf32>
    %101 = arith.mulf %100, %99 : vector<8x320xf32>
    %102 = arith.subf %98, %101 : vector<8x320xf32>
    %103 = arith.subf %95, %93 : vector<8x320xf32>
    %104 = vector.broadcast %89 : vector<1x320xf32> to vector<8x320xf32>
    %105 = arith.mulf %104, %103 : vector<8x320xf32>
    %106 = arith.addf %98, %105 : vector<8x320xf32>
    %c0_58 = arith.constant 0 : index
    %c5 = arith.constant 5 : index
    %c0_59 = arith.constant 0 : index
    %107 = vector.load %arg2[%c0_58, %c5, %c0_59] : memref<1x8x320xf32, #tpu.memory_space<vmem>>, vector<1x1x320xf32>
    %108 = vector.shape_cast %107 : vector<1x1x320xf32> to vector<1x320xf32>
    %c0_60 = arith.constant 0 : index
    %c5_61 = arith.constant 5 : index
    %c0_62 = arith.constant 0 : index
    %109 = vector.load %arg3[%c0_60, %c5_61, %c0_62] : memref<1x8x320xf32, #tpu.memory_space<vmem>>, vector<1x1x320xf32>
    %110 = vector.shape_cast %109 : vector<1x1x320xf32> to vector<1x320xf32>
    %c0_63 = arith.constant 0 : index
    %c8_64 = arith.constant 8 : index
    %c0_65 = arith.constant 0 : index
    %111 = vector.load %arg4[%c0_63, %c8_64, %c0_65] : memref<1x32x320xf32, #tpu.memory_space<vmem>>, vector<1x8x320xf32>
    %112 = vector.shape_cast %111 : vector<1x8x320xf32> to vector<8x320xf32>
    %c0_66 = arith.constant 0 : index
    %c8_67 = arith.constant 8 : index
    %c0_68 = arith.constant 0 : index
    %113 = vector.load %arg5[%c0_66, %c8_67, %c0_68] : memref<1x32x320xf32, #tpu.memory_space<vmem>>, vector<1x8x320xf32>
    %114 = vector.shape_cast %113 : vector<1x8x320xf32> to vector<8x320xf32>
    %115 = arith.addf %108, %110 : vector<1x320xf32>
    %116 = vector.broadcast %115 : vector<1x320xf32> to vector<8x320xf32>
    %117 = arith.mulf %112, %116 : vector<8x320xf32>
    %118 = arith.addf %112, %114 : vector<8x320xf32>
    %119 = vector.broadcast %110 : vector<1x320xf32> to vector<8x320xf32>
    %120 = arith.mulf %119, %118 : vector<8x320xf32>
    %121 = arith.subf %117, %120 : vector<8x320xf32>
    %122 = arith.subf %114, %112 : vector<8x320xf32>
    %123 = vector.broadcast %108 : vector<1x320xf32> to vector<8x320xf32>
    %124 = arith.mulf %123, %122 : vector<8x320xf32>
    %125 = arith.addf %117, %124 : vector<8x320xf32>
    %126 = arith.addf %102, %121 : vector<8x320xf32>
    %127 = arith.addf %106, %125 : vector<8x320xf32>
    %c0_69 = arith.constant 0 : index
    %c6 = arith.constant 6 : index
    %c0_70 = arith.constant 0 : index
    %128 = vector.load %arg2[%c0_69, %c6, %c0_70] : memref<1x8x320xf32, #tpu.memory_space<vmem>>, vector<1x1x320xf32>
    %129 = vector.shape_cast %128 : vector<1x1x320xf32> to vector<1x320xf32>
    %c0_71 = arith.constant 0 : index
    %c6_72 = arith.constant 6 : index
    %c0_73 = arith.constant 0 : index
    %130 = vector.load %arg3[%c0_71, %c6_72, %c0_73] : memref<1x8x320xf32, #tpu.memory_space<vmem>>, vector<1x1x320xf32>
    %131 = vector.shape_cast %130 : vector<1x1x320xf32> to vector<1x320xf32>
    %c0_74 = arith.constant 0 : index
    %c16_75 = arith.constant 16 : index
    %c0_76 = arith.constant 0 : index
    %132 = vector.load %arg4[%c0_74, %c16_75, %c0_76] : memref<1x32x320xf32, #tpu.memory_space<vmem>>, vector<1x8x320xf32>
    %133 = vector.shape_cast %132 : vector<1x8x320xf32> to vector<8x320xf32>
    %c0_77 = arith.constant 0 : index
    %c16_78 = arith.constant 16 : index
    %c0_79 = arith.constant 0 : index
    %134 = vector.load %arg5[%c0_77, %c16_78, %c0_79] : memref<1x32x320xf32, #tpu.memory_space<vmem>>, vector<1x8x320xf32>
    %135 = vector.shape_cast %134 : vector<1x8x320xf32> to vector<8x320xf32>
    %136 = arith.addf %129, %131 : vector<1x320xf32>
    %137 = vector.broadcast %136 : vector<1x320xf32> to vector<8x320xf32>
    %138 = arith.mulf %133, %137 : vector<8x320xf32>
    %139 = arith.addf %133, %135 : vector<8x320xf32>
    %140 = vector.broadcast %131 : vector<1x320xf32> to vector<8x320xf32>
    %141 = arith.mulf %140, %139 : vector<8x320xf32>
    %142 = arith.subf %138, %141 : vector<8x320xf32>
    %143 = arith.subf %135, %133 : vector<8x320xf32>
    %144 = vector.broadcast %129 : vector<1x320xf32> to vector<8x320xf32>
    %145 = arith.mulf %144, %143 : vector<8x320xf32>
    %146 = arith.addf %138, %145 : vector<8x320xf32>
    %147 = arith.addf %126, %142 : vector<8x320xf32>
    %148 = arith.addf %127, %146 : vector<8x320xf32>
    %c0_80 = arith.constant 0 : index
    %c7 = arith.constant 7 : index
    %c0_81 = arith.constant 0 : index
    %149 = vector.load %arg2[%c0_80, %c7, %c0_81] : memref<1x8x320xf32, #tpu.memory_space<vmem>>, vector<1x1x320xf32>
    %150 = vector.shape_cast %149 : vector<1x1x320xf32> to vector<1x320xf32>
    %c0_82 = arith.constant 0 : index
    %c7_83 = arith.constant 7 : index
    %c0_84 = arith.constant 0 : index
    %151 = vector.load %arg3[%c0_82, %c7_83, %c0_84] : memref<1x8x320xf32, #tpu.memory_space<vmem>>, vector<1x1x320xf32>
    %152 = vector.shape_cast %151 : vector<1x1x320xf32> to vector<1x320xf32>
    %c0_85 = arith.constant 0 : index
    %c24_86 = arith.constant 24 : index
    %c0_87 = arith.constant 0 : index
    %153 = vector.load %arg4[%c0_85, %c24_86, %c0_87] : memref<1x32x320xf32, #tpu.memory_space<vmem>>, vector<1x8x320xf32>
    %154 = vector.shape_cast %153 : vector<1x8x320xf32> to vector<8x320xf32>
    %c0_88 = arith.constant 0 : index
    %c24_89 = arith.constant 24 : index
    %c0_90 = arith.constant 0 : index
    %155 = vector.load %arg5[%c0_88, %c24_89, %c0_90] : memref<1x32x320xf32, #tpu.memory_space<vmem>>, vector<1x8x320xf32>
    %156 = vector.shape_cast %155 : vector<1x8x320xf32> to vector<8x320xf32>
    %157 = arith.addf %150, %152 : vector<1x320xf32>
    %158 = vector.broadcast %157 : vector<1x320xf32> to vector<8x320xf32>
    %159 = arith.mulf %154, %158 : vector<8x320xf32>
    %160 = arith.addf %154, %156 : vector<8x320xf32>
    %161 = vector.broadcast %152 : vector<1x320xf32> to vector<8x320xf32>
    %162 = arith.mulf %161, %160 : vector<8x320xf32>
    %163 = arith.subf %159, %162 : vector<8x320xf32>
    %164 = arith.subf %156, %154 : vector<8x320xf32>
    %165 = vector.broadcast %150 : vector<1x320xf32> to vector<8x320xf32>
    %166 = arith.mulf %165, %164 : vector<8x320xf32>
    %167 = arith.addf %159, %166 : vector<8x320xf32>
    %168 = arith.addf %147, %163 : vector<8x320xf32>
    %169 = arith.addf %148, %167 : vector<8x320xf32>
    %c0_91 = arith.constant 0 : index
    %c8_92 = arith.constant 8 : index
    %c0_93 = arith.constant 0 : index
    %170 = vector.load %arg6[%c0_91, %c8_92, %c0_93] : memref<1x16x320xf32, #tpu.memory_space<vmem>>, vector<1x8x320xf32>
    %171 = vector.shape_cast %170 : vector<1x8x320xf32> to vector<8x320xf32>
    %172 = vector.shape_cast %168 : vector<8x320xf32> to vector<1x8x320xf32>
    tpu.vector_store %arg6[%c0_91, %c8_92, %c0_93], %172 {strides = array<i32>} : memref<1x16x320xf32, #tpu.memory_space<vmem>>, vector<1x8x320xf32>,
    %c0_94 = arith.constant 0 : index
    %c8_95 = arith.constant 8 : index
    %c0_96 = arith.constant 0 : index
    %173 = vector.load %arg7[%c0_94, %c8_95, %c0_96] : memref<1x16x320xf32, #tpu.memory_space<vmem>>, vector<1x8x320xf32>
    %174 = vector.shape_cast %173 : vector<1x8x320xf32> to vector<8x320xf32>
    %175 = vector.shape_cast %169 : vector<8x320xf32> to vector<1x8x320xf32>
    tpu.vector_store %arg7[%c0_94, %c8_95, %c0_96], %175 {strides = array<i32>} : memref<1x16x320xf32, #tpu.memory_space<vmem>>, vector<1x8x320xf32>,
    return
  }
  func.func @transform_0(%arg0: i32, %arg1: i32) -> (i32, i32, i32) {
    %c0_i32 = arith.constant 0 : i32
    %c0_i32_0 = arith.constant 0 : i32
    return %arg0, %c0_i32, %arg1 : i32, i32, i32
  }
  func.func @transform_1(%arg0: i32, %arg1: i32) -> (i32, i32, i32) {
    %c0_i32 = arith.constant 0 : i32
    %c0_i32_0 = arith.constant 0 : i32
    return %arg0, %c0_i32, %arg1 : i32, i32, i32
  }
  func.func @transform_2(%arg0: i32, %arg1: i32) -> (i32, i32, i32) {
    %c0_i32 = arith.constant 0 : i32
    %c0_i32_0 = arith.constant 0 : i32
    return %arg0, %c0_i32, %arg1 : i32, i32, i32
  }
  func.func @transform_3(%arg0: i32, %arg1: i32) -> (i32, i32, i32) {
    %c0_i32 = arith.constant 0 : i32
    %c0_i32_0 = arith.constant 0 : i32
    return %arg0, %c0_i32, %arg1 : i32, i32, i32
  }
  func.func @transform_4(%arg0: i32, %arg1: i32) -> (i32, i32, i32) {
    %c0_i32 = arith.constant 0 : i32
    %c0_i32_0 = arith.constant 0 : i32
    return %arg0, %c0_i32, %arg1 : i32, i32, i32
  }
  func.func @transform_5(%arg0: i32, %arg1: i32) -> (i32, i32, i32) {
    %c0_i32 = arith.constant 0 : i32
    %c0_i32_0 = arith.constant 0 : i32
    return %arg0, %c0_i32, %arg1 : i32, i32, i32
  }
}

module attributes {stable_mosaic.version = 11 : i64} {
  func.func @kernel(%arg0: i32, %arg1: memref<16x1024xf32, #tpu.memory_space<vmem>>, %arg2: memref<16x1xf32, #tpu.memory_space<vmem>>, %arg3: memref<16x1024xf32, #tpu.memory_space<vmem>>) attributes {dimension_semantics = [#tpu.dimension_semantics<parallel>], iteration_bounds = array<i64: 2>, scalar_prefetch = 0 : i64, scratch_operands = 0 : i64, tpu.core_type = #tpu.core_type<tc>, window_params = [{transform_indices = @transform_0, window_bounds = array<i64: 16, 1024>}, {pipeline_mode = #tpu.pipeline_mode<synchronous>, transform_indices = @transform_1, window_bounds = array<i64: 16, 1>}, {transform_indices = @transform_2, window_bounds = array<i64: 16, 1024>}]} {
    %c0 = arith.constant 0 : index
    %c0_0 = arith.constant 0 : index
    %0 = vector.load %arg1[%c0, %c0_0] : memref<16x1024xf32, #tpu.memory_space<vmem>>, vector<16x1024xf32>
    %c0_1 = arith.constant 0 : index
    %c0_2 = arith.constant 0 : index
    %1 = vector.load %arg2[%c0_1, %c0_2] : memref<16x1xf32, #tpu.memory_space<vmem>>, vector<16x1xf32>
    %2 = vector.broadcast %1 : vector<16x1xf32> to vector<16x1024xf32>
    %3 = arith.addf %0, %2 : vector<16x1024xf32>
    %cst = arith.constant 5.000000e-01 : f32
    %4 = vector.broadcast %cst : f32 to vector<16x1024xf32>
    %5 = arith.mulf %4, %3 : vector<16x1024xf32>
    %cst_3 = arith.constant 0.707106769 : f32
    %6 = vector.broadcast %cst_3 : f32 to vector<16x1024xf32>
    %7 = arith.mulf %3, %6 : vector<16x1024xf32>
    %cst_4 = arith.constant 0.000000e+00 : f32
    %8 = vector.broadcast %cst_4 : f32 to vector<16x1024xf32>
    %9 = arith.cmpf olt, %7, %8 : vector<16x1024xf32>
    %cst_5 = arith.constant -1.000000e+00 : f32
    %cst_6 = arith.constant 1.000000e+00 : f32
    %10 = vector.broadcast %cst_5 : f32 to vector<16x1024xf32>
    %11 = vector.broadcast %cst_6 : f32 to vector<16x1024xf32>
    %12 = arith.select %9, %10, %11 : vector<16x1024xi1>, vector<16x1024xf32>
    %13 = math.absf %7 : vector<16x1024xf32>
    %cst_7 = arith.constant 0.327591091 : f32
    %14 = vector.broadcast %cst_7 : f32 to vector<16x1024xf32>
    %15 = arith.mulf %14, %13 : vector<16x1024xf32>
    %cst_8 = arith.constant 1.000000e+00 : f32
    %16 = vector.broadcast %cst_8 : f32 to vector<16x1024xf32>
    %17 = arith.addf %16, %15 : vector<16x1024xf32>
    %18 = tpu.reciprocal %17 {approx = true} : vector<16x1024xf32> -> vector<16x1024xf32>
    %19 = arith.mulf %17, %18 : vector<16x1024xf32>
    %cst_9 = arith.constant 2.000000e+00 : f32
    %20 = vector.broadcast %cst_9 : f32 to vector<16x1024xf32>
    %21 = arith.subf %20, %19 : vector<16x1024xf32>
    %22 = arith.mulf %18, %21 : vector<16x1024xf32>
    %cst_10 = arith.constant 1.06140542 : f32
    %23 = vector.broadcast %cst_10 : f32 to vector<16x1024xf32>
    %24 = arith.mulf %22, %23 : vector<16x1024xf32>
    %cst_11 = arith.constant -1.45315206 : f32
    %25 = vector.broadcast %cst_11 : f32 to vector<16x1024xf32>
    %26 = arith.addf %25, %24 : vector<16x1024xf32>
    %27 = arith.mulf %22, %26 : vector<16x1024xf32>
    %cst_12 = arith.constant 1.42141378 : f32
    %28 = vector.broadcast %cst_12 : f32 to vector<16x1024xf32>
    %29 = arith.addf %28, %27 : vector<16x1024xf32>
    %30 = arith.mulf %22, %29 : vector<16x1024xf32>
    %cst_13 = arith.constant -0.284496725 : f32
    %31 = vector.broadcast %cst_13 : f32 to vector<16x1024xf32>
    %32 = arith.addf %31, %30 : vector<16x1024xf32>
    %33 = arith.mulf %22, %32 : vector<16x1024xf32>
    %cst_14 = arith.constant 0.254829586 : f32
    %34 = vector.broadcast %cst_14 : f32 to vector<16x1024xf32>
    %35 = arith.addf %34, %33 : vector<16x1024xf32>
    %36 = arith.mulf %22, %35 : vector<16x1024xf32>
    %37 = arith.mulf %13, %13 : vector<16x1024xf32>
    %cst_15 = arith.constant 0.000000e+00 : f32
    %38 = vector.broadcast %cst_15 : f32 to vector<16x1024xf32>
    %39 = arith.subf %38, %37 : vector<16x1024xf32>
    %40 = math.exp %39 : vector<16x1024xf32>
    %41 = arith.mulf %36, %40 : vector<16x1024xf32>
    %cst_16 = arith.constant 1.000000e+00 : f32
    %42 = vector.broadcast %cst_16 : f32 to vector<16x1024xf32>
    %43 = arith.subf %42, %41 : vector<16x1024xf32>
    %44 = arith.mulf %12, %43 : vector<16x1024xf32>
    %cst_17 = arith.constant 1.000000e+00 : f32
    %45 = vector.broadcast %cst_17 : f32 to vector<16x1024xf32>
    %46 = arith.addf %45, %44 : vector<16x1024xf32>
    %47 = arith.mulf %5, %46 : vector<16x1024xf32>
    %c0_18 = arith.constant 0 : index
    %c0_19 = arith.constant 0 : index
    %48 = vector.load %arg3[%c0_18, %c0_19] : memref<16x1024xf32, #tpu.memory_space<vmem>>, vector<16x1024xf32>
    tpu.vector_store %arg3[%c0_18, %c0_19], %47 {strides = array<i32>} : memref<16x1024xf32, #tpu.memory_space<vmem>>, vector<16x1024xf32>,
    return
  }
  func.func @transform_0(%arg0: i32) -> (i32, i32) {
    %c0_i32 = arith.constant 0 : i32
    %c0_i32_0 = arith.constant 0 : i32
    return %c0_i32, %arg0 : i32, i32
  }
  func.func @transform_1(%arg0: i32) -> (i32, i32) {
    %c0_i32 = arith.constant 0 : i32
    %c0_i32_0 = arith.constant 0 : i32
    %c0_i32_1 = arith.constant 0 : i32
    return %c0_i32, %c0_i32_0 : i32, i32
  }
  func.func @transform_2(%arg0: i32) -> (i32, i32) {
    %c0_i32 = arith.constant 0 : i32
    %c0_i32_0 = arith.constant 0 : i32
    return %c0_i32, %arg0 : i32, i32
  }
}

</mosaic_0001>

<bundles_post_ra>
// kernel: _lambda_.2
= control target key start
LH: loop header
LB: loop body
LE: loop exit
PB: predicated region body
PF: predicated region fallthrough
CT: control target
= control target key end

     0   :  { %s1382_s18 = smov 0   ;;  %s1384_s19 = smov 0   ;;  %s2008_s0 = inlined_call_operand.vmem [shape: f32[4,8,320], index: 0, kind: input, shape index: {}]   ;;  %s2009_s1 = inlined_call_operand.vmem [shape: f32[4,8,320], index: 1, kind: input, shape index: {}]   ;;  %s2010_s2 = inlined_call_operand.vmem [shape: f32[4,32,320], index: 2, kind: input, shape index: {}]   ;;  %s2011_s3 = inlined_call_operand.vmem [shape: f32[4,32,320], index: 3, kind: input, shape index: {}]   ;;  %s2012_s4 = inlined_call_operand.vmem [shape: f32[4,16,320], index: 4, kind: output, shape index: {0}]   ;;  %s2013_s5 = inlined_call_operand.vmem [shape: f32[4,16,320], index: 5, kind: output, shape index: {1}]  }
   0x1   :  { %s1386_s20 = smov 0  }
   0x2 LB: > { %s28_s21 = sadd.s32 1, %s1346_s19  ;;  %p1278_p0 = scmp.ge.s32.totalorder %s1350_s20, 1  ;;  %s1350_s20 = sphi %s1386_s20, %s16_s20   ;;  %s1346_s19 = sphi %s1384_s19, %s2033_s19   ;;  %s1342_s18 = sphi %s1382_s18, %s2032_s18  }
   0x3   : > { %p30_p1 = scmp.ge.s32.totalorder %s28_s21, 4  ;;  %p264_p2 = scmp.lt.s32.totalorder %s1350_s20, 5 }
   0x5   : > { %s2035_s21 = smov (%p30_p1, %s28_s21), 0  ;;  %p265_p3 = pnand %p1278_p0, %p264_p2 }
   0x7   : > { %268 = sbr.rel (%p265_p3) target bundleno = 95 (0x5f), region = 36 }
   0xe   : > { %p337_p4 = scmp.lt.s32.totalorder %s1342_s18, 3  ;;  %v406_v0 = vlaneseq  ;;  %vm734_vm0 = vcmask 523264  }
  0x10   : > { %s2037_s18 = smov (!%p337_p4, %s1342_s18), 3  ;;  %v407_v1 = vshrl.u32 %v406_v0, 7 }
  0x11   : > { %s1301_s22 = smul.u32 24, %s2037_s18 }
  0x12   : > { %v1403_v2 = vsub.s32 0, %v407_v1  ;;  %v1405_v3 = vsub.s32 1, %v407_v1  ;;  %v1407_v4 = vsub.s32 2, %v407_v1  ;;  %s1302_s23 = smul.u32 96, %s2037_s18 }
  0x13   : > { %s1413_s26 = scalar_lea.vmem %s2008_s0, %s1301_s22  ;;  %s1418_s29 = scalar_lea.vmem %s2009_s1, %s1301_s22 }
  0x14   : > { %s1423_s7 = scalar_lea.vmem %s2010_s2, %s1302_s23  ;;  %s1428_s10 = scalar_lea.vmem %s2011_s3, %s1302_s23  ;;  %v1431_v5 = vld [vmem:[%s1413_s26] ss:$8 sm:$0x7]  ;;  %v1447_v11 = vld [vmem:[%s1413_s26 + $0x1] ss:$8 sm:$0x7] }
  0x15   : > { %v1434_v6 = vld [vmem:[%s1418_s29] ss:$8 sm:$0x7]  ;;  %v1457_v15 = vld [vmem:[%s1418_s29 + $0x1] ss:$8 sm:$0x7] }
  0x16   : > { %v1437_v7 = vld [vmem:[%s1423_s7] sm:$0xff]  ;;  %v1442_v9 = vadd.f32 %v1434_v6, %v1431_v5  ;;  %v431_v10 = vrot.slane %v1434_v6, %v1403_v2  ;;  %v435_v12 = vrot.slane %v1434_v6, %v1405_v3  ;;  %v1460_v16 = vld [vmem:[%s1423_s7 + $0x18] sm:$0xff]  ;;  %v1476_v22 = vadd.f32 %v1457_v15, %v1447_v11  ;;  %v1492_v28 = vld [vmem:[%s1423_s7 + $0x30] sm:$0xff]  ;;  %s1303_s11 = smul.u32 48, %s2037_s18 }
  0x17   : > { %v401_v8 = vld [vmem:[%s1428_s10] sm:$0xff]  ;;  %v1463_v17 = vld [vmem:[%s1428_s10 + $0x18] sm:$0xff]  ;;  %v511_v24 = vrot.slane %v1457_v15, %v1403_v2  ;;  %v1495_v29 = vld [vmem:[%s1428_s10 + $0x30] sm:$0xff]  ;;  %v515_v62 = vrot.slane %v1457_v15, %v1405_v3 }
  0x18   : > { %v1454_v14 = vadd.f32 %v401_v8, %v1437_v7  ;;  %v1466_v18 = vsub.f32 %v401_v8, %v1437_v7  ;;  %v409_v21 = vrot.slane %v1442_v9, %v1403_v2  ;;  %v1480_v23 = vadd.f32 %v1463_v17, %v1460_v16  ;;  %v1485_v25 = vld [vmem:[%s1413_s26 + $0x2] ss:$8 sm:$0x7]  ;;  %v1504_v32 = vld [vmem:[%s1413_s26 + $0x3] ss:$8 sm:$0x7]  ;;  %s1631_s14 = scalar_lea.vmem %s2012_s4, %s1303_s11  ;;  %s1784_s17 = scalar_lea.vmem %s2013_s5, %s1303_s11 }
  0x19   : > { %v1488_v26 = vld [vmem:[%s1418_s29 + $0x2] ss:$8 sm:$0x7]  ;;  %v413_v33 = vrot.slane %v1442_v9, %v1405_v3  ;;  %v489_v35 = vrot.slane %v1476_v22, %v1403_v2  ;;  %v1516_v37 = vadd.f32 %v1495_v29, %v1492_v28  ;;  %v1519_v38 = vld [vmem:[%s1418_s29 + $0x3] ss:$8 sm:$0x7]  ;;  %v493_v60 = vrot.slane %v1476_v22, %v1405_v3 }
  0x1a   : > { %v443_v27 = vmul.f32 %v431_v10, %v1454_v14  ;;  %v1499_v30 = vadd.f32 %v1488_v26, %v1485_v25  ;;  %v597_v31 = vrot.slane %v1488_v26, %v1403_v2  ;;  %v1509_v34 = vmul.f32 %v409_v21, %v1437_v7  ;;  %v1522_v39 = vld [vmem:[%s1423_s7 + $0x48] sm:$0xff]  ;;  %v1546_v47 = vld [vmem:[%s1423_s7 + $0x20] sm:$0xff]  ;;  %v1570_v57 = vld [vmem:[%s1423_s7 + $0x38] sm:$0xff] }
  0x1b   : > { %v523_v36 = vmul.f32 %v511_v24, %v1480_v23  ;;  %v1525_v40 = vld [vmem:[%s1428_s10 + $0x48] sm:$0xff]  ;;  %v1531_v42 = vadd.f32 %v1519_v38, %v1504_v32  ;;  %v683_v44 = vrot.slane %v1519_v38, %v1403_v2  ;;  %v1550_v49 = vmul.f32 %v489_v35, %v1460_v16  ;;  %v1557_v52 = vld [vmem:[%s1428_s10 + $0x20] sm:$0xff]  ;;  %v1573_v58 = vld [vmem:[%s1428_s10 + $0x38] sm:$0xff] }
  0x1c   : > { %v575_v41 = vrot.slane %v1499_v30, %v1403_v2  ;;  %v1535_v43 = vadd.f32 %v1525_v40, %v1522_v39  ;;  %v1540_v45 = vld [vmem:[%s1423_s7 + $0x8] sm:$0xff]  ;;  %v446_v48 = vsub.f32 %v1509_v34, %v443_v27  ;;  %v609_v50 = vmul.f32 %v597_v31, %v1516_v37  ;;  %v1593_v10 = vld [vmem:[%s1423_s7 + $0x50] sm:$0xff]  ;;  %v1654_v13 = vld [vmem:[%s1423_s7 + $0x40] sm:$0xff] }
  0x1d   : > { %v1543_v46 = vld [vmem:[%s1428_s10 + $0x8] sm:$0xff]  ;;  %v1554_v51 = vmul.f32 %v413_v33, %v1540_v45  ;;  %v661_v54 = vrot.slane %v1531_v42, %v1403_v2  ;;  %v526_v59 = vsub.f32 %v1550_v49, %v523_v36  ;;  %v1580_v61 = vadd.f32 %v1557_v52, %v1546_v47  ;;  %v1596_v21 = vld [vmem:[%s1428_s10 + $0x50] sm:$0xff] }
  0x1e   : > { %v1560_v53 = vmul.f32 %v575_v41, %v1492_v28  ;;  %v695_v55 = vmul.f32 %v683_v44, %v1535_v43  ;;  %v1567_v56 = vadd.f32 %v1543_v46, %v1540_v45  ;;  %v579_v8 = vrot.slane %v1499_v30, %v1405_v3  ;;  %v1610_v35 = vld [vmem:[%s1428_s10 + $0x10] sm:$0xff] }
  0x1f   : > { %2020 = vst [vmem:[#allocation3_spill] sm:$0xff] %v1580_v61  ;;  %v1587_v0 = vmul.f32 %v661_v54, %v1522_v39  ;;  %v554_v24 = vadd.f32 %v526_v59, %v446_v48  ;;  %v1599_v27 = vmul.f32 %v493_v60, %v1546_v47  ;;  %v524_v31 = vmul.f32 %v515_v62, %v1580_v61 }
  0x20   : > { %2019 = vst [vmem:[#allocation2_spill] sm:$0xff] %v1567_v56  ;;  %v612_v63 = vsub.f32 %v1560_v53, %v609_v50  ;;  %v444_v1 = vmul.f32 %v435_v12, %v1567_v56  ;;  %v1604_v33 = vadd.f32 %v1573_v58, %v1570_v57  ;;  %v1607_v12 = vld [vmem:[%s1423_s7 + $0x10] sm:$0xff]  ;;  %v1615_v44 = vmul.f32 %v579_v8, %v1570_v57  ;;  %v1643_v8 = vld [vmem:[%s1423_s7 + $0x28] sm:$0xff] }
  0x21   : > { %v698_v36 = vsub.f32 %v1587_v0, %v695_v55  ;;  %v601_v48 = vrot.slane %v1488_v26, %v1405_v3  ;;  %v527_v54 = vsub.f32 %v1599_v27, %v524_v31  ;;  %v665_v59 = vrot.slane %v1531_v42, %v1405_v3 }
  0x22   : > { %2021 = vst [vmem:[#allocation4_spill] sm:$0xff] %v1604_v33  ;;  %v447_v41 = vsub.f32 %v1554_v51, %v444_v1  ;;  %v640_v50 = vadd.f32 %v612_v63, %v554_v24  ;;  %v1624_v60 = vadd.f32 %v1596_v21, %v1593_v10  ;;  %v687_v62 = vrot.slane %v1519_v38, %v1405_v3  ;;  %v1646_v24 = vld [vmem:[%s1428_s10 + $0x28] sm:$0xff] }
  0x23   : > { %v610_v55 = vmul.f32 %v601_v48, %v1604_v33  ;;  %v417_v63 = vrot.slane %v1442_v9, %v1407_v4  ;;  %v1640_v1 = vadd.f32 %v1610_v35, %v1607_v12  ;;  %v1649_v48 = vmul.f32 %v665_v59, %v1593_v10  ;;  %v1657_v9 = vld [vmem:[%s1428_s10 + $0x40] sm:$0xff] }
  0x24   : > { %v726_v31 = vadd.f32 %v698_v36, %v640_v50  ;;  %v555_v20 = vadd.f32 %v527_v54, %v447_v41  ;;  %v497_v19 = vrot.slane %v1476_v22, %v1407_v4  ;;  %v696_v61 = vmul.f32 %v687_v62, %v1624_v60  ;;  %v1684_v62 = vld [vmem:[%s1428_s10 + $0x58] sm:$0xff] }
  0x25   : > { %2022 = vst [vmem:[#allocation5_spill] sm:$0xff] %v1640_v1  ;;  %v613_v33 = vsub.f32 %v1615_v44, %v610_v55  ;;  %v1662_v56 = vmul.f32 %v417_v63, %v1607_v12  ;;  %v2023_v36 = vrot.slane %v1434_v6, %v1407_v4  ;;  %v1674_v22 = vadd.f32 %v1646_v24, %v1643_v8  ;;  %v1681_v55 = vld [vmem:[%s1423_s7 + $0x58] sm:$0xff] }
  0x26   : > { %732 = vst [vmem:[%s1631_s14] sm:$0xff] %v726_v31  ;;  %v1670_v50 = vmul.f32 %v497_v19, %v1643_v8  ;;  %v519_v54 = vrot.slane %v1457_v15, %v1407_v4  ;;  %v583_v59 = vrot.slane %v1499_v30, %v1407_v4  ;;  %v699_v63 = vsub.f32 %v1649_v48, %v696_v61 }
  0x27   : > { %v445_v41 = vmul.f32 %v2023_v36, %v1640_v1  ;;  %2024 = vst [vmem:[#allocation6_spill] sm:$0xff] %v1674_v22  ;;  %v641_v6 = vadd.f32 %v613_v33, %v555_v20  ;;  %v1690_v31 = vadd.f32 %v1657_v9, %v1654_v13  ;;  %v605_v30 = vrot.slane %v1488_v26, %v1407_v4 }
  0x28   : > { %v525_v15 = vmul.f32 %v519_v54, %v1674_v22  ;;  %v1694_v36 = vmul.f32 %v583_v59, %v1654_v13  ;;  %v669_v20 = vrot.slane %v1531_v42, %v1407_v4  ;;  %v1702_v33 = vadd.f32 %v1684_v62, %v1681_v55 }
  0x29   : > { %v448_v19 = vsub.f32 %v1662_v56, %v445_v41  ;;  %v727_v61 = vadd.f32 %v699_v63, %v641_v6  ;;  %v691_v41 = vrot.slane %v1519_v38, %v1407_v4  ;;  %v2025_v54 = vrot.slane %v1431_v5, %v1403_v2 }
  0x2a   : > { %v528_v22 = vsub.f32 %v1670_v50, %v525_v15  ;;  %v611_v26 = vmul.f32 %v605_v30, %v1690_v31  ;;  %v1713_v1 = vmul.f32 %v669_v20, %v1681_v55  ;;  %v1717_v42 = vsub.f32 %v1463_v17, %v1460_v16 }
  0x2b   : > { %v468_v59 = vmul.f32 %v2025_v54, %v1466_v18  ;;  %733 = vst [vmem:[%s1631_s14 + $0x8] sm:$0xff] %v727_v61  ;;  %v697_v6 = vmul.f32 %v691_v41, %v1702_v33  ;;  %v1724_v63 = vsub.f32 %v1495_v29, %v1492_v28  ;;  %v622_v15 = vrot.slane %v1485_v25, %v1403_v2 }
  0x2c   : > { %v556_v30 = vadd.f32 %v528_v22, %v448_v19  ;;  %v614_v20 = vsub.f32 %v1694_v36, %v611_v26  ;;  %v2026_v17 = vrot.slane %v1447_v11, %v1403_v2  ;;  %v1735_v61 = vsub.f32 %v1525_v40, %v1522_v39 }
  0x2d   : > { %v471_v38 = vadd.f32 %v468_v59, %v1509_v34  ;;  %v700_v34 = vsub.f32 %v1713_v1, %v697_v6  ;;  %v634_v29 = vmul.f32 %v622_v15, %v1724_v63  ;;  %v708_v41 = vrot.slane %v1504_v32, %v1403_v2 }
  0x2e   : > { %v548_v54 = vmul.f32 %v2026_v17, %v1717_v42  ;;  %v1743_v22 = vsub.f32 %v1543_v46, %v1540_v45  ;;  %v642_v19 = vadd.f32 %v614_v20, %v556_v30  ;;  %v460_v26 = vrot.slane %v1431_v5, %v1405_v3 }
  0x2f   : > { %v1750_v40 = vsub.f32 %v1557_v52, %v1546_v47  ;;  %v637_v6 = vadd.f32 %v634_v29, %v1560_v53  ;;  %v720_v15 = vmul.f32 %v708_v41, %v1735_v61  ;;  %v540_v46 = vrot.slane %v1447_v11, %v1405_v3 }
  0x30   : > { %v551_v59 = vadd.f32 %v548_v54, %v1550_v49  ;;  %v1758_v30 = vsub.f32 %v1573_v58, %v1570_v57  ;;  %v728_v49 = vadd.f32 %v700_v34, %v642_v19  ;;  %v469_v17 = vmul.f32 %v460_v26, %v1743_v22  ;;  %v1798_v26 = vld [vmem:[%s1418_s29 + $0x4] ss:$8 sm:$0x7] }
  0x31   : > { %v626_v52 = vrot.slane %v1485_v25, %v1405_v3  ;;  %v723_v53 = vadd.f32 %v720_v15, %v1587_v0  ;;  %v549_v54 = vmul.f32 %v540_v46, %v1750_v40  ;;  %v1767_v29 = vsub.f32 %v1596_v21, %v1593_v10 }
  0x32   : > { %v557_v20 = vadd.f32 %v551_v59, %v471_v38  ;;  %v712_v58 = vrot.slane %v1504_v32, %v1405_v3  ;;  %735 = vst.msk [vmem:[%s1631_s14 + $0x10] sm:$0xff] %vm734_vm0, %v728_v49  ;;  %v472_v34 = vadd.f32 %v469_v17, %v1554_v51  ;;  %v1777_v19 = vsub.f32 %v1610_v35, %v1607_v12  ;;  %v1795_v59 = vld [vmem:[%s1413_s26 + $0x4] ss:$8 sm:$0x7] }
  0x33   : > { %v635_v41 = vmul.f32 %v626_v52, %v1758_v30  ;;  %v552_v0 = vadd.f32 %v549_v54, %v1599_v27  ;;  %v464_v51 = vrot.slane %v1431_v5, %v1407_v4  ;;  %v1792_v35 = vsub.f32 %v1646_v24, %v1643_v8  ;;  %v1812_v17 = vld [vmem:[%s1413_s26 + $0x5] ss:$8 sm:$0x7] }
  0x34   : > { %v643_v38 = vadd.f32 %v637_v6, %v557_v20  ;;  %v721_v21 = vmul.f32 %v712_v58, %v1767_v29  ;;  %v544_v27 = vrot.slane %v1447_v11, %v1407_v4  ;;  %v1805_v46 = vsub.f32 %v1657_v9, %v1654_v13 }
  0x35   : > { %v638_v15 = vadd.f32 %v635_v41, %v1615_v44  ;;  %v558_v5 = vadd.f32 %v552_v0, %v472_v34  ;;  %v470_v49 = vmul.f32 %v464_v51, %v1777_v19  ;;  %v630_v20 = vrot.slane %v1485_v25, %v1407_v4  ;;  %v1815_v44 = vld [vmem:[%s1418_s29 + $0x5] ss:$8 sm:$0x7]  ;;  %v1846_v0 = vld [vmem:[%s1413_s26 + $0x7] ss:$8 sm:$0x7] }
  0x36   : > { %v729_v6 = vadd.f32 %v723_v53, %v643_v38  ;;  %v724_v24 = vadd.f32 %v721_v21, %v1649_v48  ;;  %v550_v11 = vmul.f32 %v544_v27, %v1792_v35  ;;  %v1821_v9 = vsub.f32 %v1684_v62, %v1681_v55  ;;  %v1834_v38 = vld [vmem:[%s1413_s26 + $0x6] ss:$8 sm:$0x7]  ;;  %v1849_v21 = vld [vmem:[%s1418_s29 + $0x7] ss:$8 sm:$0x7] }
  0x37   : > { %v716_v48 = vrot.slane %v1504_v32, %v1407_v4  ;;  %v1827_v52 = vadd.f32 %v1798_v26, %v1795_v59  ;;  %v644_v25 = vadd.f32 %v638_v15, %v558_v5  ;;  %v473_v53 = vadd.f32 %v470_v49, %v1662_v56  ;;  %v1837_v62 = vld [vmem:[%s1418_s29 + $0x6] ss:$8 sm:$0x7] }
  0x38   : > { %736 = vst [vmem:[%s1784_s17] sm:$0xff] %v729_v6  ;;  %v636_v54 = vmul.f32 %v630_v20, %v1805_v46  ;;  %v776_v58 = vrot.slane %v1798_v26, %v1403_v2  ;;  %v553_v34 = vadd.f32 %v550_v11, %v1670_v50  ;;  %v829_v56 = vadd.f32 %v1815_v44, %v1812_v17 }
  0x39   : > { %v722_v32 = vmul.f32 %v716_v48, %v1821_v9  ;;  %v754_v41 = vrot.slane %v1827_v52, %v1403_v2  ;;  %v730_v51 = vadd.f32 %v724_v24, %v644_v25  ;;  %v856_v50 = vrot.slane %v1815_v44, %v1403_v2 }
  0x3a   : > { %v639_v6 = vadd.f32 %v636_v54, %v1694_v36  ;;  %v788_v15 = vmul.f32 %v776_v58, %v1454_v14  ;;  %v559_v27 = vadd.f32 %v553_v34, %v473_v53  ;;  %v834_v20 = vrot.slane %v829_v56, %v1403_v2 }
  0x3b   : > { %v725_v5 = vadd.f32 %v722_v32, %v1713_v1  ;;  %v1857_v49 = vmul.f32 %v754_v41, %v1437_v7  ;;  %737 = vst [vmem:[%s1784_s17 + $0x8] sm:$0xff] %v730_v51  ;;  %v868_v11 = vmul.f32 %v856_v50, %v1480_v23  ;;  %v915_v24 = vadd.f32 %v1837_v62, %v1834_v38 }
  0x3c   : > { %v942_v14 = vrot.slane %v1837_v62, %v1403_v2  ;;  %v1001_v36 = vadd.f32 %v1849_v21, %v1846_v0  ;;  %v645_v48 = vadd.f32 %v639_v6, %v559_v27  ;;  %v1870_v7 = vmul.f32 %v834_v20, %v1460_v16  ;;  %v2027_v27 = vld [vmem:[#allocation2_spill] sm:$0xff] }
  0x3d   : > { %v791_v1 = vsub.f32 %v1857_v49, %v788_v15  ;;  %v1028_v25 = vrot.slane %v1849_v21, %v1403_v2  ;;  %v920_v23 = vrot.slane %v915_v24, %v1403_v2  ;;  %v758_v58 = vrot.slane %v1827_v52, %v1405_v3 }
  0x3e   : > { %v954_v53 = vmul.f32 %v942_v14, %v1516_v37  ;;  %v1006_v54 = vrot.slane %v1001_v36, %v1403_v2  ;;  %v731_v34 = vadd.f32 %v725_v5, %v645_v48  ;;  %v871_v32 = vsub.f32 %v1870_v7, %v868_v11  ;;  %v2028_v48 = vld [vmem:[#allocation3_spill] sm:$0xff] }
  0x3f   : > { %v1040_v41 = vmul.f32 %v1028_v25, %v1535_v43  ;;  %v780_v16 = vrot.slane %v1798_v26, %v1405_v3  ;;  %v1884_v51 = vmul.f32 %v920_v23, %v1492_v28  ;;  %v1890_v37 = vmul.f32 %v758_v58, %v1540_v45  ;;  %v2029_v58 = vld [vmem:[#allocation4_spill] sm:$0xff] }
  0x40   : > { %v1887_v6 = vmul.f32 %v1006_v54, %v1522_v39  ;;  %v838_v15 = vrot.slane %v829_v56, %v1405_v3  ;;  %738 = vst.msk [vmem:[%s1784_s17 + $0x10] sm:$0xff] %vm734_vm0, %v731_v34  ;;  %v899_v50 = vadd.f32 %v871_v32, %v791_v1  ;;  %v860_v43 = vrot.slane %v1815_v44, %v1405_v3 }
  0x41   : > { %v789_v5 = vmul.f32 %v780_v16, %v2027_v27  ;;  %v924_v20 = vrot.slane %v915_v24, %v1405_v3  ;;  %v957_v28 = vsub.f32 %v1884_v51, %v954_v53  ;;  %v946_v45 = vrot.slane %v1837_v62, %v1405_v3 }
  0x42   : > { %v1043_v39 = vsub.f32 %v1887_v6, %v1040_v41  ;;  %v1902_v11 = vmul.f32 %v838_v15, %v1546_v47  ;;  %v869_v1 = vmul.f32 %v860_v43, %v2028_v48  ;;  %v1010_v23 = vrot.slane %v1001_v36, %v1405_v3 }
  0x43   : > { %v792_v14 = vsub.f32 %v1890_v37, %v789_v5  ;;  %v1909_v25 = vmul.f32 %v924_v20, %v1570_v57  ;;  %v985_v54 = vadd.f32 %v957_v28, %v899_v50  ;;  %v955_v53 = vmul.f32 %v946_v45, %v2029_v58 }
  0x44   : > { %v1032_v47 = vrot.slane %v1849_v21, %v1405_v3  ;;  %v762_v34 = vrot.slane %v1827_v52, %v1407_v4  ;;  %v872_v32 = vsub.f32 %v1902_v11, %v869_v1  ;;  %v1919_v41 = vmul.f32 %v1010_v23, %v1593_v10  ;;  %v2030_v52 = vld [vmem:[#allocation5_spill] sm:$0xff] }
  0x45   : > { %v784_v57 = vrot.slane %v1798_v26, %v1407_v4  ;;  %v842_v16 = vrot.slane %v829_v56, %v1407_v4  ;;  %v1071_v15 = vadd.f32 %v1043_v39, %v985_v54  ;;  %v958_v50 = vsub.f32 %v1909_v25, %v955_v53 }
  0x46   : > { %v1041_v27 = vmul.f32 %v1032_v47, %v1624_v60  ;;  %v1927_v5 = vmul.f32 %v762_v34, %v1607_v12  ;;  %v900_v43 = vadd.f32 %v872_v32, %v792_v14  ;;  %v864_v10 = vrot.slane %v1815_v44, %v1407_v4  ;;  %v2031_v14 = vld [vmem:[#allocation6_spill] sm:$0xff] }
  0x47   : > { %v790_v20 = vmul.f32 %v784_v57, %v2030_v52  ;;  %v848_v28 = vmul.f32 %v842_v16, %v1643_v8  ;;  %1077 = vst [vmem:[%s1631_s14 + $0x18] sm:$0xff] %v1071_v15  ;;  %v928_v56 = vrot.slane %v915_v24, %v1407_v4  ;;  %v950_v39 = vrot.slane %v1837_v62, %v1407_v4 }
  0x48   : > { %v1044_v26 = vsub.f32 %v1919_v41, %v1041_v27  ;;  %v1014_v60 = vrot.slane %v1001_v36, %v1407_v4  ;;  %v986_v12 = vadd.f32 %v958_v50, %v900_v43  ;;  %v870_v48 = vmul.f32 %v864_v10, %v2031_v14 }
  0x49   : > { %v793_v45 = vsub.f32 %v1927_v5, %v790_v20  ;;  %v1036_v8 = vrot.slane %v1849_v21, %v1407_v4  ;;  %v934_v44 = vmul.f32 %v928_v56, %v1654_v13  ;;  %v956_v1 = vmul.f32 %v950_v39, %v1690_v31 }
  0x4a   : > { %v1020_v24 = vmul.f32 %v1014_v60, %v1681_v55  ;;  %v801_v62 = vrot.slane %v1795_v59, %v1403_v2  ;;  %v1072_v23 = vadd.f32 %v1044_v26, %v986_v12  ;;  %v873_v36 = vsub.f32 %v848_v28, %v870_v48 }
  0x4b   : > { %v1042_v54 = vmul.f32 %v1036_v8, %v1702_v33  ;;  %v881_v58 = vrot.slane %v1812_v17, %v1403_v2  ;;  %v959_v53 = vsub.f32 %v934_v44, %v956_v1  ;;  %v967_v13 = vrot.slane %v1834_v38, %v1403_v2 }
  0x4c   : > { %v813_v47 = vmul.f32 %v801_v62, %v1466_v18  ;;  %v1053_v31 = vrot.slane %v1846_v0, %v1403_v2  ;;  %1078 = vst [vmem:[%s1631_s14 + $0x20] sm:$0xff] %v1072_v23  ;;  %v901_v55 = vadd.f32 %v873_v36, %v793_v45  ;;  %v805_v33 = vrot.slane %v1795_v59, %v1405_v3 }
  0x4d   : > { %v1045_v21 = vsub.f32 %v1020_v24, %v1042_v54  ;;  %v893_v34 = vmul.f32 %v881_v58, %v1717_v42  ;;  %v979_v57 = vmul.f32 %v967_v13, %v1724_v63  ;;  %v885_v16 = vrot.slane %v1812_v17, %v1405_v3 }
  0x4e   : > { %v816_v32 = vadd.f32 %v813_v47, %v1857_v49  ;;  %v1065_v18 = vmul.f32 %v1053_v31, %v1735_v61  ;;  %v987_v15 = vadd.f32 %v959_v53, %v901_v55  ;;  %v814_v50 = vmul.f32 %v805_v33, %v1743_v22 }
  0x4f   : > { %v896_v2 = vadd.f32 %v893_v34, %v1870_v7  ;;  %v971_v42 = vrot.slane %v1834_v38, %v1405_v3  ;;  %v982_v27 = vadd.f32 %v979_v57, %v1884_v51  ;;  %v894_v63 = vmul.f32 %v885_v16, %v1750_v40 }
  0x50   : > { %v1068_v49 = vadd.f32 %v1065_v18, %v1887_v6  ;;  %v1057_v61 = vrot.slane %v1846_v0, %v1405_v3  ;;  %v1073_v43 = vadd.f32 %v1045_v21, %v987_v15  ;;  %v817_v20 = vadd.f32 %v814_v50, %v1890_v37 }
  0x51   : > { %v902_v52 = vadd.f32 %v896_v2, %v816_v32  ;;  %v980_v7 = vmul.f32 %v971_v42, %v1758_v30  ;;  %v897_v22 = vadd.f32 %v894_v63, %v1902_v11  ;;  %v809_v51 = vrot.slane %v1795_v59, %v1407_v4 }
  0x52   : > { %v1066_v10 = vmul.f32 %v1057_v61, %v1767_v29  ;;  %v889_v6 = vrot.slane %v1812_v17, %v1407_v4  ;;  %1079 = vst.msk [vmem:[%s1631_s14 + $0x28] sm:$0xff] %vm734_vm0, %v1073_v43  ;;  %v975_v37 = vrot.slane %v1834_v38, %v1407_v4  ;;  %v1061_v30 = vrot.slane %v1846_v0, %v1407_v4 }
  0x53   : > { %v988_v3 = vadd.f32 %v982_v27, %v902_v52  ;;  %v983_v40 = vadd.f32 %v980_v7, %v1909_v25  ;;  %v903_v29 = vadd.f32 %v897_v22, %v817_v20  ;;  %v815_v59 = vmul.f32 %v809_v51, %v1777_v19 }
  0x54   : > { %v1069_v11 = vadd.f32 %v1066_v10, %v1919_v41  ;;  %v895_v17 = vmul.f32 %v889_v6, %v1792_v35  ;;  %v981_v56 = vmul.f32 %v975_v37, %v1805_v46  ;;  %v1067_v25 = vmul.f32 %v1061_v30, %v1821_v9 }
  0x55   : > { %v1074_v26 = vadd.f32 %v1068_v49, %v988_v3  ;;  %v989_v39 = vadd.f32 %v983_v40, %v903_v29  ;;  %v818_v38 = vadd.f32 %v815_v59, %v1927_v5 }
  0x56   : > { %v898_v60 = vadd.f32 %v895_v17, %v848_v28  ;;  %v984_v4 = vadd.f32 %v981_v56, %v934_v44  ;;  %v1070_v45 = vadd.f32 %v1067_v25, %v1020_v24 }
  0x57   : > { %1080 = vst [vmem:[%s1784_s17 + $0x18] sm:$0xff] %v1074_v26  ;;  %v1075_v0 = vadd.f32 %v1069_v11, %v989_v39 }
  0x58   : > { %v904_v12 = vadd.f32 %v898_v60, %v818_v38 }
  0x59   : > { %1081 = vst [vmem:[%s1784_s17 + $0x20] sm:$0xff] %v1075_v0 }
  0x5a   : > { %v990_v41 = vadd.f32 %v984_v4, %v904_v12 }
  0x5c   : > { %v1076_v19 = vadd.f32 %v1070_v45, %v990_v41 }
  0x5e   : > { %1082 = vst.msk [vmem:[%s1784_s17 + $0x28] sm:$0xff] %vm734_vm0, %v1076_v19 }
  0x5f PF: > { %s16_s20 = sadd.s32 1, %s1350_s20   ;;  %s2032_s18 = smov %s1346_s19 }
  0x60   : > { %p13_p5 = scmp.ge.s32.totalorder %s16_s20, 6   ;;  %s2033_s19 = smov %s2035_s21 }
  0x62   :  { %15 = sbr.rel (!%p13_p5) target bundleno = 2 (0x2), region = 101 }

// kernel: reverse.1
= control target key start
LH: loop header
LB: loop body
LE: loop exit
PB: predicated region body
PF: predicated region fallthrough
CT: control target
= control target key end

     0   :  { %s1160_s0 = inlined_call_operand.vmem [shape: f32[2,8,16,16,3], index: 0, kind: input, shape index: {}]   ;;  %s1161_s1 = inlined_call_operand.vmem [shape: f32[2,8,16,16,3], index: 1, kind: output, shape index: {}]  }
   0x1   :  { %v384_v0 = vld [vmem:[%s1160_s0 + $0x20] sm:$0xff]  ;;  %v387_v2 = vld [vmem:[%s1160_s0 + $0x50] sm:$0xff]  ;;  %v478_v48 = vld [vmem:[%s1160_s0 + $0x28] sm:$0xff] }
   0x2   :  { %v385_v1 = vld [vmem:[%s1160_s0 + $0x1a0] sm:$0xff]  ;;  %4 = vst [vmem:[%s1161_s1] sm:$0xff] %v384_v0  ;;  %388 = vst [vmem:[%s1161_s1 + $0x30] sm:$0xff] %v387_v2  ;;  %v389_v3 = vld [vmem:[%s1160_s0 + $0x1d0] sm:$0xff] }
   0x3   :  { %386 = vst [vmem:[%s1161_s1 + $0x180] sm:$0xff] %v385_v1  ;;  %v391_v4 = vld [vmem:[%s1160_s0 + $0x80] sm:$0xff]  ;;  %390 = vst [vmem:[%s1161_s1 + $0x1b0] sm:$0xff] %v389_v3  ;;  %v395_v6 = vld [vmem:[%s1160_s0 + $0xb0] sm:$0xff] }
   0x4   :  { %v393_v5 = vld [vmem:[%s1160_s0 + $0x200] sm:$0xff]  ;;  %392 = vst [vmem:[%s1161_s1 + $0x60] sm:$0xff] %v391_v4  ;;  %v397_v7 = vld [vmem:[%s1160_s0 + $0x230] sm:$0xff]  ;;  %396 = vst [vmem:[%s1161_s1 + $0x90] sm:$0xff] %v395_v6 }
   0x5   :  { %394 = vst [vmem:[%s1161_s1 + $0x1e0] sm:$0xff] %v393_v5  ;;  %v399_v8 = vld [vmem:[%s1160_s0 + $0xe0] sm:$0xff]  ;;  %398 = vst [vmem:[%s1161_s1 + $0x210] sm:$0xff] %v397_v7  ;;  %v403_v10 = vld [vmem:[%s1160_s0 + $0x110] sm:$0xff] }
   0x6   :  { %400 = vst [vmem:[%s1161_s1 + $0xc0] sm:$0xff] %v399_v8  ;;  %v401_v9 = vld [vmem:[%s1160_s0 + $0x260] sm:$0xff]  ;;  %v405_v11 = vld [vmem:[%s1160_s0 + $0x290] sm:$0xff]  ;;  %404 = vst [vmem:[%s1161_s1 + $0xf0] sm:$0xff] %v403_v10 }
   0x7   :  { %402 = vst [vmem:[%s1161_s1 + $0x240] sm:$0xff] %v401_v9  ;;  %406 = vst [vmem:[%s1161_s1 + $0x270] sm:$0xff] %v405_v11  ;;  %v407_v12 = vld [vmem:[%s1160_s0 + $0x140] sm:$0xff]  ;;  %v411_v14 = vld [vmem:[%s1160_s0 + $0x170] sm:$0xff] }
   0x8   :  { %v409_v13 = vld [vmem:[%s1160_s0 + $0x2c0] sm:$0xff]  ;;  %408 = vst [vmem:[%s1161_s1 + $0x120] sm:$0xff] %v407_v12  ;;  %412 = vst [vmem:[%s1161_s1 + $0x150] sm:$0xff] %v411_v14  ;;  %v413_v15 = vld [vmem:[%s1160_s0 + $0x2f0] sm:$0xff] }
   0x9   :  { %410 = vst [vmem:[%s1161_s1 + $0x2a0] sm:$0xff] %v409_v13  ;;  %v415_v16 = vld [vmem:[%s1160_s0 + $0x10] sm:$0xff]  ;;  %414 = vst [vmem:[%s1161_s1 + $0x2d0] sm:$0xff] %v413_v15  ;;  %v419_v18 = vld [vmem:[%s1160_s0 + $0x40] sm:$0xff] }
   0xa   :  { %v417_v17 = vld [vmem:[%s1160_s0 + $0x190] sm:$0xff]  ;;  %416 = vst [vmem:[%s1161_s1 + $0x10] sm:$0xff] %v415_v16  ;;  %v421_v19 = vld [vmem:[%s1160_s0 + $0x1c0] sm:$0xff]  ;;  %420 = vst [vmem:[%s1161_s1 + $0x40] sm:$0xff] %v419_v18 }
   0xb   :  { %418 = vst [vmem:[%s1161_s1 + $0x190] sm:$0xff] %v417_v17  ;;  %v423_v20 = vld [vmem:[%s1160_s0 + $0x70] sm:$0xff]  ;;  %422 = vst [vmem:[%s1161_s1 + $0x1c0] sm:$0xff] %v421_v19  ;;  %v427_v22 = vld [vmem:[%s1160_s0 + $0xa0] sm:$0xff] }
   0xc   :  { %424 = vst [vmem:[%s1161_s1 + $0x70] sm:$0xff] %v423_v20  ;;  %v425_v21 = vld [vmem:[%s1160_s0 + $0x1f0] sm:$0xff]  ;;  %v429_v23 = vld [vmem:[%s1160_s0 + $0x220] sm:$0xff]  ;;  %428 = vst [vmem:[%s1161_s1 + $0xa0] sm:$0xff] %v427_v22 }
   0xd   :  { %426 = vst [vmem:[%s1161_s1 + $0x1f0] sm:$0xff] %v425_v21  ;;  %430 = vst [vmem:[%s1161_s1 + $0x220] sm:$0xff] %v429_v23  ;;  %v431_v24 = vld [vmem:[%s1160_s0 + $0xd0] sm:$0xff]  ;;  %v435_v26 = vld [vmem:[%s1160_s0 + $0x100] sm:$0xff] }
   0xe   :  { %v433_v25 = vld [vmem:[%s1160_s0 + $0x250] sm:$0xff]  ;;  %432 = vst [vmem:[%s1161_s1 + $0xd0] sm:$0xff] %v431_v24  ;;  %436 = vst [vmem:[%s1161_s1 + $0x100] sm:$0xff] %v435_v26  ;;  %v437_v27 = vld [vmem:[%s1160_s0 + $0x280] sm:$0xff] }
   0xf   :  { %434 = vst [vmem:[%s1161_s1 + $0x250] sm:$0xff] %v433_v25  ;;  %v439_v28 = vld [vmem:[%s1160_s0 + $0x130] sm:$0xff]  ;;  %438 = vst [vmem:[%s1161_s1 + $0x280] sm:$0xff] %v437_v27  ;;  %v443_v30 = vld [vmem:[%s1160_s0 + $0x160] sm:$0xff] }
  0x10   :  { %v441_v29 = vld [vmem:[%s1160_s0 + $0x2b0] sm:$0xff]  ;;  %440 = vst [vmem:[%s1161_s1 + $0x130] sm:$0xff] %v439_v28  ;;  %v445_v31 = vld [vmem:[%s1160_s0 + $0x2e0] sm:$0xff]  ;;  %444 = vst [vmem:[%s1161_s1 + $0x160] sm:$0xff] %v443_v30 }
  0x11   :  { %442 = vst [vmem:[%s1161_s1 + $0x2b0] sm:$0xff] %v441_v29  ;;  %v129_v32 = vld [vmem:[%s1160_s0] sm:$0xff]  ;;  %446 = vst [vmem:[%s1161_s1 + $0x2e0] sm:$0xff] %v445_v31  ;;  %v450_v34 = vld [vmem:[%s1160_s0 + $0x30] sm:$0xff] }
  0x12   :  { %447 = vst [vmem:[%s1161_s1 + $0x20] sm:$0xff] %v129_v32  ;;  %v448_v33 = vld [vmem:[%s1160_s0 + $0x180] sm:$0xff]  ;;  %v452_v35 = vld [vmem:[%s1160_s0 + $0x1b0] sm:$0xff]  ;;  %451 = vst [vmem:[%s1161_s1 + $0x50] sm:$0xff] %v450_v34 }
  0x13   :  { %449 = vst [vmem:[%s1161_s1 + $0x1a0] sm:$0xff] %v448_v33  ;;  %453 = vst [vmem:[%s1161_s1 + $0x1d0] sm:$0xff] %v452_v35  ;;  %v454_v36 = vld [vmem:[%s1160_s0 + $0x60] sm:$0xff]  ;;  %v458_v38 = vld [vmem:[%s1160_s0 + $0x90] sm:$0xff] }
  0x14   :  { %v456_v37 = vld [vmem:[%s1160_s0 + $0x1e0] sm:$0xff]  ;;  %455 = vst [vmem:[%s1161_s1 + $0x80] sm:$0xff] %v454_v36  ;;  %459 = vst [vmem:[%s1161_s1 + $0xb0] sm:$0xff] %v458_v38  ;;  %v460_v39 = vld [vmem:[%s1160_s0 + $0x210] sm:$0xff] }
  0x15   :  { %457 = vst [vmem:[%s1161_s1 + $0x200] sm:$0xff] %v456_v37  ;;  %v462_v40 = vld [vmem:[%s1160_s0 + $0xc0] sm:$0xff]  ;;  %461 = vst [vmem:[%s1161_s1 + $0x230] sm:$0xff] %v460_v39  ;;  %v466_v42 = vld [vmem:[%s1160_s0 + $0xf0] sm:$0xff] }
  0x16   :  { %v464_v41 = vld [vmem:[%s1160_s0 + $0x240] sm:$0xff]  ;;  %463 = vst [vmem:[%s1161_s1 + $0xe0] sm:$0xff] %v462_v40  ;;  %v468_v43 = vld [vmem:[%s1160_s0 + $0x270] sm:$0xff]  ;;  %467 = vst [vmem:[%s1161_s1 + $0x110] sm:$0xff] %v466_v42 }
  0x17   :  { %465 = vst [vmem:[%s1161_s1 + $0x260] sm:$0xff] %v464_v41  ;;  %v470_v44 = vld [vmem:[%s1160_s0 + $0x120] sm:$0xff]  ;;  %469 = vst [vmem:[%s1161_s1 + $0x290] sm:$0xff] %v468_v43  ;;  %v474_v46 = vld [vmem:[%s1160_s0 + $0x150] sm:$0xff] }
  0x18   :  { %471 = vst [vmem:[%s1161_s1 + $0x140] sm:$0xff] %v470_v44  ;;  %v472_v45 = vld [vmem:[%s1160_s0 + $0x2a0] sm:$0xff]  ;;  %v476_v47 = vld [vmem:[%s1160_s0 + $0x2d0] sm:$0xff]  ;;  %475 = vst [vmem:[%s1161_s1 + $0x170] sm:$0xff] %v474_v46 }
  0x19   :  { %473 = vst [vmem:[%s1161_s1 + $0x2c0] sm:$0xff] %v472_v45  ;;  %477 = vst [vmem:[%s1161_s1 + $0x2f0] sm:$0xff] %v476_v47  ;;  %v480_v49 = vld [vmem:[%s1160_s0 + $0x1a8] sm:$0xff]  ;;  %v482_v50 = vld [vmem:[%s1160_s0 + $0x58] sm:$0xff] }
  0x1a   :  { %479 = vst [vmem:[%s1161_s1 + $0x8] sm:$0xff] %v478_v48  ;;  %481 = vst [vmem:[%s1161_s1 + $0x188] sm:$0xff] %v480_v49  ;;  %v484_v51 = vld [vmem:[%s1160_s0 + $0x1d8] sm:$0xff]  ;;  %v486_v52 = vld [vmem:[%s1160_s0 + $0x88] sm:$0xff] }
  0x1b   :  { %483 = vst [vmem:[%s1161_s1 + $0x38] sm:$0xff] %v482_v50  ;;  %v488_v53 = vld [vmem:[%s1160_s0 + $0x208] sm:$0xff]  ;;  %485 = vst [vmem:[%s1161_s1 + $0x1b8] sm:$0xff] %v484_v51  ;;  %v490_v54 = vld [vmem:[%s1160_s0 + $0xb8] sm:$0xff] }
  0x1c   :  { %487 = vst [vmem:[%s1161_s1 + $0x68] sm:$0xff] %v486_v52  ;;  %489 = vst [vmem:[%s1161_s1 + $0x1e8] sm:$0xff] %v488_v53  ;;  %v492_v55 = vld [vmem:[%s1160_s0 + $0x238] sm:$0xff]  ;;  %v494_v56 = vld [vmem:[%s1160_s0 + $0xe8] sm:$0xff] }
  0x1d   :  { %491 = vst [vmem:[%s1161_s1 + $0x98] sm:$0xff] %v490_v54  ;;  %493 = vst [vmem:[%s1161_s1 + $0x218] sm:$0xff] %v492_v55  ;;  %v496_v57 = vld [vmem:[%s1160_s0 + $0x268] sm:$0xff]  ;;  %v498_v58 = vld [vmem:[%s1160_s0 + $0x118] sm:$0xff] }
  0x1e   :  { %495 = vst [vmem:[%s1161_s1 + $0xc8] sm:$0xff] %v494_v56  ;;  %v500_v59 = vld [vmem:[%s1160_s0 + $0x298] sm:$0xff]  ;;  %497 = vst [vmem:[%s1161_s1 + $0x248] sm:$0xff] %v496_v57  ;;  %v502_v60 = vld [vmem:[%s1160_s0 + $0x148] sm:$0xff] }
  0x1f   :  { %499 = vst [vmem:[%s1161_s1 + $0xf8] sm:$0xff] %v498_v58  ;;  %501 = vst [vmem:[%s1161_s1 + $0x278] sm:$0xff] %v500_v59  ;;  %v504_v61 = vld [vmem:[%s1160_s0 + $0x2c8] sm:$0xff]  ;;  %v506_v62 = vld [vmem:[%s1160_s0 + $0x178] sm:$0xff] }
  0x20   :  { %503 = vst [vmem:[%s1161_s1 + $0x128] sm:$0xff] %v502_v60  ;;  %505 = vst [vmem:[%s1161_s1 + $0x2a8] sm:$0xff] %v504_v61  ;;  %v508_v63 = vld [vmem:[%s1160_s0 + $0x2f8] sm:$0xff]  ;;  %v514_v2 = vld [vmem:[%s1160_s0 + $0x48] sm:$0xff] }
  0x21   :  { %507 = vst [vmem:[%s1161_s1 + $0x158] sm:$0xff] %v506_v62  ;;  %v510_v0 = vld [vmem:[%s1160_s0 + $0x18] sm:$0xff]  ;;  %509 = vst [vmem:[%s1161_s1 + $0x2d8] sm:$0xff] %v508_v63  ;;  %v516_v3 = vld [vmem:[%s1160_s0 + $0x1c8] sm:$0xff] }
  0x22   :  { %v512_v1 = vld [vmem:[%s1160_s0 + $0x198] sm:$0xff]  ;;  %511 = vst [vmem:[%s1161_s1 + $0x18] sm:$0xff] %v510_v0  ;;  %515 = vst [vmem:[%s1161_s1 + $0x48] sm:$0xff] %v514_v2  ;;  %v522_v6 = vld [vmem:[%s1160_s0 + $0xa8] sm:$0xff] }
  0x23   :  { %513 = vst [vmem:[%s1161_s1 + $0x198] sm:$0xff] %v512_v1  ;;  %v518_v4 = vld [vmem:[%s1160_s0 + $0x78] sm:$0xff]  ;;  %517 = vst [vmem:[%s1161_s1 + $0x1c8] sm:$0xff] %v516_v3  ;;  %v524_v7 = vld [vmem:[%s1160_s0 + $0x228] sm:$0xff] }
  0x24   :  { %519 = vst [vmem:[%s1161_s1 + $0x78] sm:$0xff] %v518_v4  ;;  %v520_v5 = vld [vmem:[%s1160_s0 + $0x1f8] sm:$0xff]  ;;  %523 = vst [vmem:[%s1161_s1 + $0xa8] sm:$0xff] %v522_v6  ;;  %v530_v10 = vld [vmem:[%s1160_s0 + $0x108] sm:$0xff] }
  0x25   :  { %521 = vst [vmem:[%s1161_s1 + $0x1f8] sm:$0xff] %v520_v5  ;;  %525 = vst [vmem:[%s1161_s1 + $0x228] sm:$0xff] %v524_v7  ;;  %v526_v8 = vld [vmem:[%s1160_s0 + $0xd8] sm:$0xff]  ;;  %v532_v11 = vld [vmem:[%s1160_s0 + $0x288] sm:$0xff] }
  0x26   :  { %v528_v9 = vld [vmem:[%s1160_s0 + $0x258] sm:$0xff]  ;;  %527 = vst [vmem:[%s1161_s1 + $0xd8] sm:$0xff] %v526_v8  ;;  %531 = vst [vmem:[%s1161_s1 + $0x108] sm:$0xff] %v530_v10  ;;  %v538_v14 = vld [vmem:[%s1160_s0 + $0x168] sm:$0xff] }
  0x27   :  { %529 = vst [vmem:[%s1161_s1 + $0x258] sm:$0xff] %v528_v9  ;;  %v534_v12 = vld [vmem:[%s1160_s0 + $0x138] sm:$0xff]  ;;  %533 = vst [vmem:[%s1161_s1 + $0x288] sm:$0xff] %v532_v11  ;;  %v540_v15 = vld [vmem:[%s1160_s0 + $0x2e8] sm:$0xff] }
  0x28   :  { %v536_v13 = vld [vmem:[%s1160_s0 + $0x2b8] sm:$0xff]  ;;  %535 = vst [vmem:[%s1161_s1 + $0x138] sm:$0xff] %v534_v12  ;;  %v542_v16 = vld [vmem:[%s1160_s0 + $0x8] sm:$0xff]  ;;  %539 = vst [vmem:[%s1161_s1 + $0x168] sm:$0xff] %v538_v14 }
  0x29   :  { %537 = vst [vmem:[%s1161_s1 + $0x2b8] sm:$0xff] %v536_v13  ;;  %541 = vst [vmem:[%s1161_s1 + $0x2e8] sm:$0xff] %v540_v15  ;;  %v544_v17 = vld [vmem:[%s1160_s0 + $0x188] sm:$0xff]  ;;  %v546_v18 = vld [vmem:[%s1160_s0 + $0x38] sm:$0xff] }
  0x2a   :  { %543 = vst [vmem:[%s1161_s1 + $0x28] sm:$0xff] %v542_v16  ;;  %v548_v19 = vld [vmem:[%s1160_s0 + $0x1b8] sm:$0xff]  ;;  %545 = vst [vmem:[%s1161_s1 + $0x1a8] sm:$0xff] %v544_v17  ;;  %v550_v20 = vld [vmem:[%s1160_s0 + $0x68] sm:$0xff] }
  0x2b   :  { %547 = vst [vmem:[%s1161_s1 + $0x58] sm:$0xff] %v546_v18  ;;  %549 = vst [vmem:[%s1161_s1 + $0x1d8] sm:$0xff] %v548_v19  ;;  %v552_v21 = vld [vmem:[%s1160_s0 + $0x1e8] sm:$0xff]  ;;  %v554_v22 = vld [vmem:[%s1160_s0 + $0x98] sm:$0xff] }
  0x2c   :  { %551 = vst [vmem:[%s1161_s1 + $0x88] sm:$0xff] %v550_v20  ;;  %553 = vst [vmem:[%s1161_s1 + $0x208] sm:$0xff] %v552_v21  ;;  %v556_v23 = vld [vmem:[%s1160_s0 + $0x218] sm:$0xff]  ;;  %v558_v24 = vld [vmem:[%s1160_s0 + $0xc8] sm:$0xff] }
  0x2d   :  { %555 = vst [vmem:[%s1161_s1 + $0xb8] sm:$0xff] %v554_v22  ;;  %v560_v25 = vld [vmem:[%s1160_s0 + $0x248] sm:$0xff]  ;;  %557 = vst [vmem:[%s1161_s1 + $0x238] sm:$0xff] %v556_v23  ;;  %v562_v26 = vld [vmem:[%s1160_s0 + $0xf8] sm:$0xff] }
  0x2e   :  { %559 = vst [vmem:[%s1161_s1 + $0xe8] sm:$0xff] %v558_v24  ;;  %561 = vst [vmem:[%s1161_s1 + $0x268] sm:$0xff] %v560_v25  ;;  %v564_v27 = vld [vmem:[%s1160_s0 + $0x278] sm:$0xff]  ;;  %v566_v28 = vld [vmem:[%s1160_s0 + $0x128] sm:$0xff] }
  0x2f   :  { %563 = vst [vmem:[%s1161_s1 + $0x118] sm:$0xff] %v562_v26  ;;  %565 = vst [vmem:[%s1161_s1 + $0x298] sm:$0xff] %v564_v27  ;;  %v568_v29 = vld [vmem:[%s1160_s0 + $0x2a8] sm:$0xff]  ;;  %v570_v30 = vld [vmem:[%s1160_s0 + $0x158] sm:$0xff] }
  0x30   :  { %567 = vst [vmem:[%s1161_s1 + $0x148] sm:$0xff] %v566_v28  ;;  %v572_v31 = vld [vmem:[%s1160_s0 + $0x2d8] sm:$0xff]  ;;  %569 = vst [vmem:[%s1161_s1 + $0x2c8] sm:$0xff] %v568_v29 }
  0x31   :  { %571 = vst [vmem:[%s1161_s1 + $0x178] sm:$0xff] %v570_v30  ;;  %573 = vst [vmem:[%s1161_s1 + $0x2f8] sm:$0xff] %v572_v31 }

// kernel: tile.6
= control target key start
LH: loop header
LB: loop body
LE: loop exit
PB: predicated region body
PF: predicated region fallthrough
CT: control target
= control target key end

     0   :  { %s22_s0 = inlined_call_operand.vmem [shape: f32[8], index: 0, kind: input, shape index: {}]   ;;  %s23_s1 = inlined_call_operand.vmem [shape: f32[2,8], index: 1, kind: output, shape index: {}]  }
   0x1   :  { %v4_v0 = vld [vmem:[%s22_s0] ss:$0 sm:$0xff] }
   0x2   :  { %5 = vst [vmem:[%s23_s1] sm:$0x3] %v4_v0 }

// kernel: tile.0
= control target key start
LH: loop header
LB: loop body
LE: loop exit
PB: predicated region body
PF: predicated region fallthrough
CT: control target
= control target key end

     0   :  { %s66_s8 = smov 125   ;;  %vm7_vm0 = vcmask 7168   ;;  %s67_s11 = smov 126   ;;  %s117_s0 = inlined_call_operand.vmem [shape: f32[2,8], index: 0, kind: input, shape index: {}]   ;;  %s118_s1 = inlined_call_operand.vmem [shape: f32[16,1], index: 1, kind: output, shape index: {}]  }
   0x1   :  { %v4_v0 = vld [vmem:[%s117_s0] sm:$0x3]  ;;  %s65_s0 = smov 127   ;;  %s68_s12 = smov 124  }
   0x2   :  { %5 = vst [vmem:[#allocation0] sm:$0x3] %v4_v0  ;;  %s69_s13 = smov 123   ;;  %s70_s14 = smov 122  }
   0x3   :  { %s71_s15 = smov 121  }
   0x9   :  { %v9_v1 = vld [vmem:[#allocation0] sm:$0x3]  }
   0xa   :  { %v21_v2 = vld [vmem:[#allocation0] sm:$0x3]   ;;  %10 = vrot.lane.b32.xlu0 %v9_v1, %s65_s0 }
   0xb   :  { %22 = vrot.lane.b32.xlu1 %v21_v2, %s66_s8  ;;  %v15_v3 = vld [vmem:[#allocation0] sm:$0x3]  }
   0xc   :  { %v27_v4 = vld [vmem:[#allocation0] sm:$0x3]  }
   0xd   :  { %v6_v5 = vld [vmem:[#allocation0] sm:$0x3]  }
   0xe   :  { %8 = vst.msk [vmem:[%s118_s1] ss:$8 sm:$0x3] %vm7_vm0, %v6_v5   ;;  %16 = vrot.lane.b32.xlu0 %v15_v3, %s67_s11  ;;  %v33_v6 = vld [vmem:[#allocation0] sm:$0x3]  }
   0xf   :  { %28 = vrot.lane.b32.xlu1 %v27_v4, %s68_s12  ;;  %v39_v7 = vld [vmem:[#allocation0] sm:$0x3]  }
  0x10   :  { %v45_v8 = vld [vmem:[#allocation0] sm:$0x3]  }
  0x12   :  { %34 = vrot.lane.b32.xlu0 %v33_v6, %s69_s13 }
  0x13   :  { %40 = vrot.lane.b32.xlu1 %v39_v7, %s70_s14 }
  0x16   :  { %46 = vrot.lane.b32.xlu0 %v45_v8, %s71_s15 }
  0x7c   :  { %v11_v9 = vpop.permute.xlu0 %10  }
  0x7d   :  { %v23_v10 = vpop.permute.xlu1 %22   ;;  %51 = vst.msk [vmem:[%s118_s1 + $0x1] ss:$8 sm:$0x3] %vm7_vm0, %v11_v9  }
  0x7e   :  { %53 = vst.msk [vmem:[%s118_s1 + $0x3] ss:$8 sm:$0x3] %vm7_vm0, %v23_v10  }
  0x80   :  { %v17_v11 = vpop.permute.xlu0 %16  }
  0x81   :  { %v29_v12 = vpop.permute.xlu1 %28   ;;  %52 = vst.msk [vmem:[%s118_s1 + $0x2] ss:$8 sm:$0x3] %vm7_vm0, %v17_v11  }
  0x82   :  { %54 = vst.msk [vmem:[%s118_s1 + $0x4] ss:$8 sm:$0x3] %vm7_vm0, %v29_v12  }
  0x84   :  { %v35_v13 = vpop.permute.xlu0 %34  }
  0x85   :  { %v41_v14 = vpop.permute.xlu1 %40   ;;  %55 = vst.msk [vmem:[%s118_s1 + $0x5] ss:$8 sm:$0x3] %vm7_vm0, %v35_v13  }
  0x86   :  { %56 = vst.msk [vmem:[%s118_s1 + $0x6] ss:$8 sm:$0x3] %vm7_vm0, %v41_v14  }
  0x88   :  { %v47_v15 = vpop.permute.xlu0 %46  }
  0x89   :  { %57 = vst.msk [vmem:[%s118_s1 + $0x7] ss:$8 sm:$0x3] %vm7_vm0, %v47_v15  }

// kernel: _lambda_.3
= control target key start
LH: loop header
LB: loop body
LE: loop exit
PB: predicated region body
PF: predicated region fallthrough
CT: control target
= control target key end

     0   :  { %s976_s9 = smov 0   ;;  %s978_s10 = smov 0   ;;  %s1506_s0 = inlined_call_operand.vmem [shape: f32[16,2048], index: 0, kind: input, shape index: {}]   ;;  %s1507_s1 = inlined_call_operand.vmem [shape: f32[16,1], index: 1, kind: input, shape index: {}]   ;;  %s1508_s2 = inlined_call_operand.vmem [shape: f32[16,2048], index: 2, kind: output, shape index: {}]  }
   0x1   :  { %s980_s11 = smov 0  }
   0x2 LB: > { %s827_s12 = sadd.s32 4294967295, %s957_s11   ;;  %s993_s13 = sadd.s32 1, %s957_s11   ;;  %s957_s11 = sphi %s980_s11, %s1582_s11   ;;  %s953_s10 = sphi %s978_s10, %s1581_s10   ;;  %s949_s9 = sphi %s976_s9, %s1580_s9  }
   0x3   : > { %s16_s14 = ssub.s32 %s957_s11, %s993_s13  ;;  %s19_s15 = sadd.s32 1, %s953_s10 }
   0x4   : > { %p17_p0 = scmp.eq.s32.totalorder %s16_s14, 0  ;;  %p26_p1 = scmp.ne.s32.totalorder %s953_s10, %s949_s9 }
   0x5   : > { %p27_p2 = scmp.eq.s32.totalorder %s957_s11, 0  ;;  %p77_p3 = scmp.eq.s32.totalorder %s827_s12, 1 }
   0x6   : > { %s1004_s16 = scalar_select %p17_p0, %s953_s10, %s19_s15  }
   0x7   : > { %p28_p4 = por %p27_p2, %p26_p1  ;;  %p1006_p5 = por %p77_p3, %p26_p1 }
   0x8   : > { %p830_p6 = scmp.ge.s32.totalorder %s957_s11, 2 }
   0xa   : > { %102 = sbr.rel (%p830_p6) target bundleno = 29 (0x1d), region = 20 }
  0x11   : > { %105 = sbr.rel (!%p28_p4) target bundleno = 29 (0x1d), region = 24  ;;  %s107_s18 = sand.u32 (%p28_p4), 1, %s953_s10  }
  0x12   : > { %s842_s19 = sshll.u32 (%p28_p4), %s957_s11, 6  ;;  %s831_s20 = sshll.u32 (%p28_p4), %s107_s18, 7 }
  0x13   : > { %s1016_s23 = scalar_lea.vmem (%p28_p4), %s1506_s0, %s842_s19  ;;  %s109_s24 = scalar_lea.vmem (%p28_p4), [#allocation2], %s831_s20 }
  0x14   : > { %v125_v0 = vld [vmem:[%s1016_s23] sm:$0xff] (%p28_p4)  ;;  %v127_v1 = vld [vmem:[%s1016_s23 + $0x8] sm:$0xff] (%p28_p4)  ;;  %v129_v2 = vld [vmem:[%s1016_s23 + $0x10] sm:$0xff] (%p28_p4) }
  0x15   : > { %126 = vst [vmem:[%s109_s24] sm:$0xff] (%p28_p4), %v125_v0  ;;  %128 = vst [vmem:[%s109_s24 + $0x8] sm:$0xff] (%p28_p4), %v127_v1  ;;  %v131_v3 = vld [vmem:[%s1016_s23 + $0x18] sm:$0xff] (%p28_p4)  ;;  %v133_v4 = vld [vmem:[%s1016_s23 + $0x20] sm:$0xff] (%p28_p4) }
  0x16   : > { %130 = vst [vmem:[%s109_s24 + $0x10] sm:$0xff] (%p28_p4), %v129_v2  ;;  %v135_v5 = vld [vmem:[%s1016_s23 + $0x28] sm:$0xff] (%p28_p4)  ;;  %132 = vst [vmem:[%s109_s24 + $0x18] sm:$0xff] (%p28_p4), %v131_v3  ;;  %v137_v6 = vld [vmem:[%s1016_s23 + $0x30] sm:$0xff] (%p28_p4) }
  0x17   : > { %134 = vst [vmem:[%s109_s24 + $0x20] sm:$0xff] (%p28_p4), %v133_v4  ;;  %136 = vst [vmem:[%s109_s24 + $0x28] sm:$0xff] (%p28_p4), %v135_v5  ;;  %v139_v7 = vld [vmem:[%s1016_s23 + $0x38] sm:$0xff] (%p28_p4)  ;;  %v141_v8 = vld [vmem:[%s1016_s23 + $0x80] sm:$0xff] (%p28_p4) }
  0x18   : > { %138 = vst [vmem:[%s109_s24 + $0x30] sm:$0xff] %v137_v6  ;;  %140 = vst [vmem:[%s109_s24 + $0x38] sm:$0xff] %v139_v7  ;;  %v143_v9 = vld [vmem:[%s1016_s23 + $0x88] sm:$0xff]  ;;  %v145_v10 = vld [vmem:[%s1016_s23 + $0x90] sm:$0xff] }
  0x19   : > { %142 = vst [vmem:[%s109_s24 + $0x40] sm:$0xff] %v141_v8  ;;  %v147_v11 = vld [vmem:[%s1016_s23 + $0x98] sm:$0xff]  ;;  %144 = vst [vmem:[%s109_s24 + $0x48] sm:$0xff] %v143_v9  ;;  %v149_v12 = vld [vmem:[%s1016_s23 + $0xa0] sm:$0xff] }
  0x1a   : > { %146 = vst [vmem:[%s109_s24 + $0x50] sm:$0xff] %v145_v10  ;;  %148 = vst [vmem:[%s109_s24 + $0x58] sm:$0xff] %v147_v11  ;;  %v151_v13 = vld [vmem:[%s1016_s23 + $0xa8] sm:$0xff]  ;;  %v153_v14 = vld [vmem:[%s1016_s23 + $0xb0] sm:$0xff] }
  0x1b   : > { %150 = vst [vmem:[%s109_s24 + $0x60] sm:$0xff] %v149_v12  ;;  %152 = vst [vmem:[%s109_s24 + $0x68] sm:$0xff] %v151_v13  ;;  %v155_v15 = vld [vmem:[%s1016_s23 + $0xb8] sm:$0xff] }
  0x1c   : > { %154 = vst [vmem:[%s109_s24 + $0x70] sm:$0xff] %v153_v14  ;;  %156 = vst [vmem:[%s109_s24 + $0x78] sm:$0xff] %v155_v15 }
  0x1d PF: > { %p834_p7 = scmp.ge.s32.totalorder %s957_s11, 1  ;;  %p161_p8 = scmp.lt.s32.totalorder %s957_s11, 3 }
  0x1f   : > { %p162_p9 = pnand %p834_p7, %p161_p8 }
  0x21   : > { %165 = sbr.rel (%p162_p9) target bundleno = 306 (0x132), region = 47 }
  0x28   : > { %v206_v16 = vld [vmem:[%s1507_s1] sm:$0xff]  ;;  %v959_v17 = vmov 0   ;;  %v207_v18 = vld [vmem:[%s1507_s1 + $0x8] sm:$0xff]  ;;  %s168_s29 = sand.u32 1, %s949_s9   ;;  %s843_s5 = sshll.u32 (%p1006_p5), %s827_s12, 6 }
  0x29   : > { %870 = vset.pattern.permute.xlu0 %v959_v17  ;;  %s1043_s30 = sshll.u32 %s168_s29, 7  ;;  %s723_s8 = scalar_lea.vmem (%p1006_p5), %s1508_s2, %s843_s5 }
  0x2a   : > { %210 = vperm.xlu0 %870, %v206_v16   ;;  %s1046_s3 = scalar_lea.vmem [#allocation2], %s1043_s30  ;;  %s1420_s4 = scalar_lea.vmem [#allocation3], %s1043_s30 }
  0x2b   : > { %v190_v20 = vld [vmem:[%s1046_s3] sm:$0xff]  ;;  %v191_v21 = vld [vmem:[%s1046_s3 + $0x8] sm:$0xff]  ;;  %v192_v22 = vld [vmem:[%s1046_s3 + $0x10] sm:$0xff] }
  0x2c   : > { %v193_v23 = vld [vmem:[%s1046_s3 + $0x18] sm:$0xff]  ;;  %v194_v24 = vld [vmem:[%s1046_s3 + $0x20] sm:$0xff]  ;;  %v195_v25 = vld [vmem:[%s1046_s3 + $0x28] sm:$0xff] }
  0x2d   : > { %v196_v26 = vld [vmem:[%s1046_s3 + $0x30] sm:$0xff]  ;;  %v197_v27 = vld [vmem:[%s1046_s3 + $0x38] sm:$0xff]  ;;  %v198_v29 = vld [vmem:[%s1046_s3 + $0x40] sm:$0xff] }
  0x2e   : > { %215 = vperm.xlu0 %870, %v207_v18   ;;  %v199_v30 = vld [vmem:[%s1046_s3 + $0x48] sm:$0xff]  ;;  %v200_v31 = vld [vmem:[%s1046_s3 + $0x50] sm:$0xff]  ;;  %v201_v32 = vld [vmem:[%s1046_s3 + $0x58] sm:$0xff] }
  0x2f   : > { %v202_v33 = vld [vmem:[%s1046_s3 + $0x60] sm:$0xff]  ;;  %v203_v34 = vld [vmem:[%s1046_s3 + $0x68] sm:$0xff]  ;;  %v204_v46 = vld [vmem:[%s1046_s3 + $0x70] sm:$0xff] }
  0x30   : > { %v205_v54 = vld [vmem:[%s1046_s3 + $0x78] sm:$0xff] }
  0xa9   : > { %v211_v19 = vpop.permute.xlu0 %210 }
  0xaa   : > { %v218_v35 = vadd.f32 %v211_v19, %v190_v20  ;;  %v219_v36 = vadd.f32 %v211_v19, %v191_v21  ;;  %v220_v37 = vadd.f32 %v211_v19, %v192_v22  ;;  %v221_v38 = vadd.f32 %v211_v19, %v193_v23 }
  0xab   : > { %v222_v39 = vadd.f32 %v211_v19, %v194_v24  ;;  %v223_v40 = vadd.f32 %v211_v19, %v195_v25  ;;  %v224_v41 = vadd.f32 %v211_v19, %v196_v26  ;;  %v225_v42 = vadd.f32 %v211_v19, %v197_v27 }
  0xac   : > { %v1063_v50 = vmul.f32 0.5, %v218_v35  ;;  %v1065_v51 = vmul.f32 0.5, %v219_v36  ;;  %v1067_v52 = vmul.f32 0.5, %v220_v37  ;;  %v1069_v53 = vmul.f32 0.5, %v221_v38 }
  0xad   : > { %v216_v28 = vpop.permute.xlu0 %215  ;;  %v1072_v55 = vmul.f32 0.5, %v222_v39  ;;  %v1074_v56 = vmul.f32 0.5, %v223_v40  ;;  %v1076_v57 = vmul.f32 0.5, %v224_v41  ;;  %v1078_v58 = vmul.f32 0.5, %v225_v42 }
  0xae   : > { %v226_v43 = vadd.f32 %v216_v28, %v198_v29  ;;  %v227_v44 = vadd.f32 %v216_v28, %v199_v30  ;;  %v228_v45 = vadd.f32 %v216_v28, %v200_v31  ;;  %v229_v47 = vadd.f32 %v216_v28, %v201_v32  ;;  %1514 = vst [vmem:[#allocation4_spill] sm:$0xff] %v1063_v50 }
  0xaf   : > { %v230_v48 = vadd.f32 %v216_v28, %v202_v33  ;;  %v231_v49 = vadd.f32 %v216_v28, %v203_v34  ;;  %1515 = vst [vmem:[#allocation5_spill] sm:$0xff] %v1065_v51  ;;  %1516 = vst [vmem:[#allocation6_spill] sm:$0xff] %v1067_v52  ;;  %v1080_v59 = vadd.f32 %v216_v28, %v204_v46  ;;  %v250_v2 = vmul.f32 0.70710677, %v218_v35 }
  0xb0   : > { %1517 = vst [vmem:[#allocation7_spill] sm:$0xff] %v1069_v53  ;;  %1518 = vst [vmem:[#allocation8_spill] sm:$0xff] %v1072_v55  ;;  %v1082_v60 = vmul.f32 0.5, %v226_v43  ;;  %v1084_v61 = vmul.f32 0.5, %v227_v44  ;;  %v1086_v62 = vmul.f32 0.5, %v228_v45  ;;  %v1088_v63 = vmul.f32 0.5, %v229_v47 }
  0xb1   : > { %1519 = vst [vmem:[#allocation9_spill] sm:$0xff] %v1074_v56  ;;  %1520 = vst [vmem:[#allocation10_spill] sm:$0xff] %v1076_v57  ;;  %v1090_v0 = vmul.f32 0.5, %v230_v48  ;;  %v1092_v1 = vmul.f32 0.5, %v231_v49  ;;  %v1094_v3 = vadd.f32 %v216_v28, %v205_v54  ;;  %v251_v4 = vmul.f32 0.70710677, %v219_v36 }
  0xb2   : > { %1521 = vst [vmem:[#allocation11_spill] sm:$0xff] %v1078_v58  ;;  %1522 = vst [vmem:[#allocation12_spill] sm:$0xff] %v1080_v59  ;;  %v252_v5 = vmul.f32 0.70710677, %v220_v37  ;;  %v253_v6 = vmul.f32 0.70710677, %v221_v38 }
  0xb3   : > { %1523 = vst [vmem:[#allocation13_spill] sm:$0xff] %v1082_v60  ;;  %1524 = vst [vmem:[#allocation14_spill] sm:$0xff] %v1084_v61  ;;  %v254_v7 = vmul.f32 0.70710677, %v222_v39  ;;  %v255_v8 = vmul.f32 0.70710677, %v223_v40 }
  0xb4   : > { %1525 = vst [vmem:[#allocation15_spill] sm:$0xff] %v1086_v62  ;;  %1526 = vst [vmem:[#allocation16_spill] sm:$0xff] %v1088_v63  ;;  %v256_v9 = vmul.f32 0.70710677, %v224_v41  ;;  %v257_v10 = vmul.f32 0.70710677, %v225_v42 }
  0xb5   : > { %1527 = vst [vmem:[#allocation17_spill] sm:$0xff] %v1090_v0  ;;  %1528 = vst [vmem:[#allocation18_spill] sm:$0xff] %v1092_v1  ;;  %v258_v11 = vmul.f32 0.70710677, %v226_v43  ;;  %v259_v12 = vmul.f32 0.70710677, %v227_v44 }
  0xb6   : > { %1529 = vst [vmem:[#allocation19_spill] sm:$0xff] %v1094_v3  ;;  %v260_v13 = vmul.f32 0.70710677, %v228_v45  ;;  %v261_v14 = vmul.f32 0.70710677, %v229_v47  ;;  %vm266_vm0 = vcmp.lt.f32.partialorder %v250_v2, 0.0 }
  0xb7   : > { %v262_v15 = vmul.f32 0.70710677, %v230_v48  ;;  %v1096_v16 = vmul.f32 0.70710677, %v231_v49  ;;  %v1099_v17 = vmul.f32 0.70710677, %v1080_v59 }
  0xb8   : > { %v1102_v18 = vmul.f32 0.70710677, %v1094_v3  ;;  %vm267_vm1 = vcmp.lt.f32.partialorder %v251_v4, 0.0  ;;  %vm268_vm2 = vcmp.lt.f32.partialorder %v252_v5, 0.0  ;;  %vm269_vm3 = vcmp.lt.f32.partialorder %v253_v6, 0.0 }
  0xb9   : > { %vm270_vm4 = vcmp.lt.f32.partialorder %v254_v7, 0.0  ;;  %vm271_vm5 = vcmp.lt.f32.partialorder %v255_v8, 0.0  ;;  %vm272_vm6 = vcmp.lt.f32.partialorder %v256_v9, 0.0  ;;  %vm273_vm7 = vcmp.lt.f32.partialorder %v257_v10, 0.0 }
  0xba   : > { %vm274_vm8 = vcmp.lt.f32.partialorder %v258_v11, 0.0  ;;  %vm275_vm9 = vcmp.lt.f32.partialorder %v259_v12, 0.0  ;;  %vm276_vm10 = vcmp.lt.f32.partialorder %v260_v13, 0.0  ;;  %vm277_vm11 = vcmp.lt.f32.partialorder %v261_v14, 0.0 }
  0xbb   : > { %vm278_vm12 = vcmp.lt.f32.partialorder %v262_v15, 0.0  ;;  %v1509_v19 = vmov 1.0   ;;  %v298_v33 = vand.u32 2147483647, %v250_v2  ;;  %v299_v34 = vand.u32 2147483647, %v251_v4 }
  0xbc   : > { %v1105_v20 = vsel %vm266_vm0, -1.0, %v1509_v19  ;;  %v1108_v21 = vsel %vm267_vm1, -1.0, %v1509_v19  ;;  %v1111_v22 = vsel %vm268_vm2, -1.0, %v1509_v19  ;;  %v1114_v23 = vsel %vm269_vm3, -1.0, %v1509_v19 }
  0xbd   : > { %1530 = vst [vmem:[#allocation20_spill] sm:$0xff] %v1114_v23  ;;  %v1117_v24 = vsel %vm270_vm4, -1.0, %v1509_v19  ;;  %v1120_v25 = vsel %vm271_vm5, -1.0, %v1509_v19  ;;  %v1123_v26 = vsel %vm272_vm6, -1.0, %v1509_v19  ;;  %v1126_v27 = vsel %vm273_vm7, -1.0, %v1509_v19 }
  0xbe   : > { %1531 = vst [vmem:[#allocation21_spill] sm:$0xff] %v1117_v24  ;;  %1532 = vst [vmem:[#allocation22_spill] sm:$0xff] %v1120_v25  ;;  %v1129_v28 = vsel %vm274_vm8, -1.0, %v1509_v19  ;;  %v1132_v29 = vsel %vm275_vm9, -1.0, %v1509_v19  ;;  %v1135_v30 = vsel %vm276_vm10, -1.0, %v1509_v19  ;;  %v1138_v31 = vsel %vm277_vm11, -1.0, %v1509_v19 }
  0xbf   : > { %1533 = vst [vmem:[#allocation23_spill] sm:$0xff] %v1123_v26  ;;  %1534 = vst [vmem:[#allocation24_spill] sm:$0xff] %v1126_v27  ;;  %v1141_v32 = vsel %vm278_vm12, -1.0, %v1509_v19  ;;  %v300_v35 = vand.u32 2147483647, %v252_v5  ;;  %v1144_v47 = vmul.f32 %v298_v33, %v298_v33  ;;  %v1148_v2 = vmul.f32 %v299_v34, %v299_v34 }
  0xc0   : > { %1535 = vst [vmem:[#allocation25_spill] sm:$0xff] %v1129_v28  ;;  %1536 = vst [vmem:[#allocation26_spill] sm:$0xff] %v1132_v29  ;;  %v301_v36 = vand.u32 2147483647, %v253_v6  ;;  %v302_v37 = vand.u32 2147483647, %v254_v7 }
  0xc1   : > { %1537 = vst [vmem:[#allocation27_spill] sm:$0xff] %v1135_v30  ;;  %1538 = vst [vmem:[#allocation28_spill] sm:$0xff] %v1138_v31  ;;  %v303_v38 = vand.u32 2147483647, %v255_v8  ;;  %v304_v39 = vand.u32 2147483647, %v256_v9  ;;  %v1150_v7 = vmul.f32 %v300_v35, %v300_v35 }
  0xc2   : > { %1539 = vst [vmem:[#allocation29_spill] sm:$0xff] %v1141_v32  ;;  %v305_v40 = vand.u32 2147483647, %v257_v10  ;;  %v306_v41 = vand.u32 2147483647, %v258_v11  ;;  %v1152_v11 = vmul.f32 %v301_v36, %v301_v36  ;;  %vm279_vm13 = vcmp.lt.f32.partialorder %v1096_v16, 0.0 }
  0xc3   : > { %v307_v42 = vand.u32 2147483647, %v259_v12  ;;  %v308_v43 = vand.u32 2147483647, %v260_v13  ;;  %v309_v44 = vand.u32 2147483647, %v261_v14  ;;  %v1156_v3 = vmul.f32 %v303_v38, %v303_v38 }
  0xc4   : > { %v310_v45 = vand.u32 2147483647, %v262_v15  ;;  %v311_v46 = vand.u32 2147483647, %v1096_v16  ;;  %v312_v48 = vand.u32 2147483647, %v1099_v17  ;;  %v1154_v15 = vmul.f32 %v302_v37, %v302_v37 }
  0xc5   : > { %v313_v49 = vand.u32 2147483647, %v1102_v18  ;;  %v314_v54 = vmul.f32 0.3275911, %v298_v33  ;;  %v315_v4 = vmul.f32 0.3275911, %v299_v34 }
  0xc6   : > { %v316_v5 = vmul.f32 0.3275911, %v300_v35  ;;  %v317_v6 = vmul.f32 0.3275911, %v301_v36  ;;  %v318_v8 = vmul.f32 0.3275911, %v302_v37  ;;  %v1158_v35 = vmul.f32 %v304_v39, %v304_v39 }
  0xc7   : > { %v319_v9 = vmul.f32 0.3275911, %v303_v38  ;;  %v320_v10 = vmul.f32 0.3275911, %v304_v39  ;;  %v321_v12 = vmul.f32 0.3275911, %v305_v40  ;;  %v1162_v36 = vmul.f32 %v305_v40, %v305_v40 }
  0xc8   : > { %v322_v13 = vmul.f32 0.3275911, %v306_v41  ;;  %v323_v14 = vmul.f32 0.3275911, %v307_v42  ;;  %v324_v19 = vmul.f32 0.3275911, %v308_v43 }
  0xc9   : > { %v325_v1 = vmul.f32 0.3275911, %v309_v44  ;;  %v330_v33 = vadd.f32 1.0, %v314_v54  ;;  %v326_v34 = vmul.f32 0.3275911, %v310_v45  ;;  %v331_v63 = vadd.f32 1.0, %v315_v4 }
  0xca   : > { %v327_v0 = vmul.f32 0.3275911, %v311_v46  ;;  %v328_v59 = vmul.f32 0.3275911, %v312_v48  ;;  %v329_v62 = vmul.f32 0.3275911, %v313_v49  ;;  %v1170_v54 = vmul.f32 %v306_v41, %v306_v41 }
  0xcb   : > { %v1160_v61 = vadd.f32 1.0, %v316_v5  ;;  %v1164_v60 = vadd.f32 1.0, %v317_v6  ;;  %v1166_v37 = vadd.f32 1.0, %v318_v8  ;;  %v1168_v58 = vadd.f32 1.0, %v319_v9 }
  0xcc   : > { %v1172_v38 = vadd.f32 1.0, %v320_v10  ;;  %v1174_v57 = vadd.f32 1.0, %v321_v12  ;;  %v1176_v39 = vadd.f32 1.0, %v322_v13  ;;  %871 = vrcp.f32 %v330_v33 }
  0xcd   : > { %v1178_v4 = vadd.f32 1.0, %v323_v14  ;;  %v1180_v5 = vadd.f32 1.0, %v324_v19  ;;  %v1182_v40 = vadd.f32 1.0, %v325_v1  ;;  %873 = vrcp.f32 %v331_v63 }
  0xce   : > { %v1184_v6 = vadd.f32 1.0, %v326_v34  ;;  %v1186_v8 = vadd.f32 1.0, %v327_v0  ;;  %v1188_v41 = vadd.f32 1.0, %v328_v59  ;;  %875 = vrcp.f32 %v1160_v61 }
  0xcf   : > { %v1191_v9 = vadd.f32 1.0, %v329_v62  ;;  %877 = vrcp.f32 %v1164_v60  ;;  %v563_v10 = vmul.f32 %v307_v42, %v307_v42  ;;  %v1194_v12 = vmul.f32 %v308_v43, %v308_v43 }
  0xd0   : > { %879 = vrcp.f32 %v1166_v37  ;;  %v1197_v1 = vmul.f32 %v309_v44, %v309_v44  ;;  %v1199_v19 = vmul.f32 %v310_v45, %v310_v45  ;;  %v1201_v13 = vmul.f32 %v311_v46, %v311_v46 }
  0xd1   : > { %881 = vrcp.f32 %v1168_v58  ;;  %v1204_v59 = vmul.f32 %v312_v48, %v312_v48  ;;  %v1206_v0 = vmul.f32 %v313_v49, %v313_v49  ;;  %v570_v62 = vsub.f32 0.0, %v1144_v47 }
  0xd2   : > { %883 = vrcp.f32 %v1172_v38  ;;  %v571_v42 = vsub.f32 0.0, %v1148_v2  ;;  %v572_v43 = vsub.f32 0.0, %v1150_v7  ;;  %v573_v44 = vsub.f32 0.0, %v1152_v11 }
  0xd3   : > { %885 = vrcp.f32 %v1174_v57  ;;  %v574_v45 = vsub.f32 0.0, %v1154_v15  ;;  %v575_v46 = vsub.f32 0.0, %v1156_v3  ;;  %v576_v48 = vsub.f32 0.0, %v1158_v35 }
  0xd4   : > { %887 = vrcp.f32 %v1176_v39  ;;  %v577_v47 = vsub.f32 0.0, %v1162_v36  ;;  %v578_v49 = vsub.f32 0.0, %v1170_v54  ;;  %v579_v14 = vsub.f32 0.0, %v563_v10 }
  0xd5   : > { %889 = vrcp.f32 %v1178_v4  ;;  %v580_v2 = vsub.f32 0.0, %v1194_v12  ;;  %v581_v7 = vsub.f32 0.0, %v1197_v1  ;;  %v582_v11 = vsub.f32 0.0, %v1199_v19 }
  0xd6   : > { %v872_v15 = vpop.eup %871  ;;  %891 = vrcp.f32 %v1180_v5  ;;  %v583_v3 = vsub.f32 0.0, %v1201_v13  ;;  %v584_v34 = vsub.f32 0.0, %v1204_v59  ;;  %v585_v35 = vsub.f32 0.0, %v1206_v0 }
  0xd7   : > { %v874_v36 = vpop.eup %873  ;;  %893 = vrcp.f32 %v1182_v40  ;;  %v362_v54 = vmul.f32 %v872_v15, %v330_v33  ;;  %v1229_v10 = vmul.f32 1.442695, %v570_v62  ;;  %v1231_v12 = vmul.f32 1.442695, %v571_v42 }
  0xd8   : > { %v876_v1 = vpop.eup %875  ;;  %895 = vrcp.f32 %v1184_v6  ;;  %v363_v19 = vmul.f32 %v874_v36, %v331_v63  ;;  %v1234_v56 = vmul.f32 1.442695, %v572_v43  ;;  %v1236_v32 = vmul.f32 1.442695, %v573_v44 }
  0xd9   : > { %v878_v13 = vpop.eup %877  ;;  %897 = vrcp.f32 %v1186_v8  ;;  %v364_v59 = vmul.f32 %v876_v1, %v1160_v61  ;;  %v378_v0 = vsub.f32 2.0, %v362_v54  ;;  %v1240_v31 = vmul.f32 1.442695, %v574_v45 }
  0xda   : > { %v880_v33 = vpop.eup %879  ;;  %899 = vrcp.f32 %v1188_v41  ;;  %v365_v62 = vmul.f32 %v878_v13, %v1164_v60  ;;  %v1244_v42 = vmul.f32 1.442695, %v575_v46  ;;  %v1246_v63 = vmul.f32 1.442695, %v576_v48 }
  0xdb   : > { %v882_v43 = vpop.eup %881  ;;  %901 = vrcp.f32 %v1191_v9  ;;  %v366_v44 = vmul.f32 %v880_v33, %v1166_v37  ;;  %v379_v30 = vsub.f32 2.0, %v363_v19  ;;  %v380_v29 = vsub.f32 2.0, %v364_v59 }
  0xdc   : > { %v884_v61 = vpop.eup %883  ;;  %v367_v45 = vmul.f32 %v882_v43, %v1168_v58  ;;  %v1252_v54 = vmul.f32 1.442695, %v577_v47  ;;  %v1254_v28 = vmul.f32 1.442695, %v578_v49  ;;  %v1256_v60 = vmul.f32 1.442695, %v579_v14 }
  0xdd   : > { %v886_v46 = vpop.eup %885  ;;  %v368_v48 = vmul.f32 %v884_v61, %v1172_v38  ;;  %v1259_v27 = vmul.f32 %v872_v15, %v378_v0  ;;  %v1261_v26 = vmul.f32 1.442695, %v580_v2  ;;  %v1263_v37 = vmul.f32 1.442695, %v581_v7 }
  0xde   : > { %v888_v19 = vpop.eup %887  ;;  %v369_v59 = vmul.f32 %v886_v46, %v1174_v57  ;;  %v381_v25 = vsub.f32 2.0, %v365_v62  ;;  %v1266_v58 = vmul.f32 1.442695, %v582_v11  ;;  %v1268_v47 = vmul.f32 1.442695, %v583_v3 }
  0xdf   : > { %1540 = vst [vmem:[#allocation30_spill] sm:$0xff] %v1263_v37  ;;  %v890_v49 = vpop.eup %889  ;;  %v370_v14 = vmul.f32 %v888_v19, %v1176_v39  ;;  %v382_v55 = vsub.f32 2.0, %v366_v44  ;;  %v1271_v53 = vmul.f32 %v874_v36, %v379_v30  ;;  %v1273_v38 = vmul.f32 %v876_v1, %v380_v29 }
  0xe0   : > { %1541 = vst [vmem:[#allocation31_spill] sm:$0xff] %v1266_v58  ;;  %1542 = vst [vmem:[#allocation32_spill] sm:$0xff] %v1268_v47  ;;  %v892_v2 = vpop.eup %891  ;;  %v371_v7 = vmul.f32 %v890_v49, %v1178_v4  ;;  %v383_v15 = vsub.f32 2.0, %v367_v45  ;;  %v1276_v0 = vmul.f32 1.442695, %v584_v34  ;;  %v384_v62 = vsub.f32 2.0, %v368_v48 }
  0xe1   : > { %v1278_v57 = vmul.f32 1.442695, %v585_v35  ;;  %v894_v11 = vpop.eup %893  ;;  %v372_v3 = vmul.f32 %v892_v2, %v1180_v5  ;;  %v385_v52 = vsub.f32 2.0, %v369_v59  ;;  %v410_v39 = vmul.f32 1.0614054, %v1259_v27 }
  0xe2   : > { %1543 = vst [vmem:[#allocation33_spill] sm:$0xff] %v1276_v0  ;;  %v896_v44 = vpop.eup %895  ;;  %v373_v30 = vmul.f32 %v894_v11, %v1182_v40  ;;  %v386_v29 = vsub.f32 2.0, %v370_v14  ;;  %v387_v36 = vsub.f32 2.0, %v371_v7  ;;  %v1283_v1 = vmul.f32 %v878_v13, %v381_v25 }
  0xe3   : > { %1544 = vst [vmem:[#allocation34_spill] sm:$0xff] %v1278_v57  ;;  %v898_v4 = vpop.eup %897  ;;  %v374_v34 = vmul.f32 %v896_v44, %v1184_v6  ;;  %v1286_v45 = vmul.f32 %v880_v33, %v382_v55  ;;  %v411_v35 = vmul.f32 1.0614054, %v1271_v53  ;;  %v412_v5 = vmul.f32 1.0614054, %v1273_v38 }
  0xe4   : > { %v900_v48 = vpop.eup %899  ;;  %v375_v59 = vmul.f32 %v898_v4, %v1186_v8  ;;  %v388_v57 = vsub.f32 2.0, %v372_v3  ;;  %v389_v0 = vsub.f32 2.0, %v373_v30  ;;  %v1291_v51 = vmul.f32 %v882_v43, %v383_v15 }
  0xe5   : > { %v902_v40 = vpop.eup %901  ;;  %v376_v25 = vmul.f32 %v900_v48, %v1188_v41  ;;  %v390_v13 = vsub.f32 2.0, %v374_v34  ;;  %v1294_v14 = vmul.f32 %v884_v61, %v384_v62  ;;  %v1296_v6 = vmul.f32 %v886_v46, %v385_v52 }
  0xe6   : > { %v377_v55 = vmul.f32 %v902_v40, %v1191_v9  ;;  %v391_v33 = vsub.f32 2.0, %v375_v59  ;;  %v1299_v7 = vmul.f32 %v888_v19, %v386_v29  ;;  %v1301_v50 = vmul.f32 %v890_v49, %v387_v36 }
  0xe7   : > { %v1545_v8 = vmov 1.0   ;;  %v392_v15 = vsub.f32 2.0, %v376_v25  ;;  %v413_v41 = vmul.f32 1.0614054, %v1283_v1  ;;  %v414_v61 = vmul.f32 1.0614054, %v1286_v45 }
  0xe8   : > { %v1306_v43 = vsel %vm279_vm13, -1.0, %v1545_v8  ;;  %v393_v3 = vsub.f32 2.0, %v377_v55  ;;  %v1310_v52 = vmul.f32 %v892_v2, %v388_v57  ;;  %v1312_v46 = vmul.f32 %v894_v11, %v389_v0 }
  0xe9   : > { %1546 = vst [vmem:[#allocation35_spill] sm:$0xff] %v1306_v43  ;;  %v415_v9 = vmul.f32 1.0614054, %v1291_v51  ;;  %v1315_v19 = vmul.f32 %v896_v44, %v390_v13  ;;  %v1317_v49 = vmul.f32 %v898_v4, %v391_v33  ;;  %v416_v16 = vmul.f32 1.0614054, %v1294_v14 }
  0xea   : > { %v417_v62 = vmul.f32 1.0614054, %v1296_v6  ;;  %v1321_v30 = vmul.f32 %v900_v48, %v392_v15  ;;  %v1323_v29 = vmul.f32 %v902_v40, %v393_v3  ;;  %v418_v36 = vmul.f32 1.0614054, %v1299_v7 }
  0xeb   : > { %v419_v2 = vmul.f32 1.0614054, %v1301_v50  ;;  %v426_v0 = vadd.f32 -1.4531521, %v410_v39  ;;  %v427_v57 = vadd.f32 -1.4531521, %v411_v35  ;;  %903 = vpow2.f32 %v1229_v10 }
  0xec   : > { %v428_v11 = vadd.f32 -1.4531521, %v412_v5  ;;  %v420_v44 = vmul.f32 1.0614054, %v1310_v52  ;;  %v421_v4 = vmul.f32 1.0614054, %v1312_v46  ;;  %905 = vpow2.f32 %v1231_v12 }
  0xed   : > { %v429_v34 = vadd.f32 -1.4531521, %v413_v41  ;;  %v422_v59 = vmul.f32 1.0614054, %v1315_v19  ;;  %v423_v25 = vmul.f32 1.0614054, %v1317_v49  ;;  %v442_v39 = vmul.f32 %v426_v0, %v1259_v27 }
  0xee   : > { %v430_v48 = vadd.f32 -1.4531521, %v414_v61  ;;  %v424_v40 = vmul.f32 1.0614054, %v1321_v30  ;;  %v425_v13 = vmul.f32 1.0614054, %v1323_v29  ;;  %v443_v35 = vmul.f32 %v427_v57, %v1271_v53 }
  0xef   : > { %v431_v55 = vadd.f32 -1.4531521, %v415_v9  ;;  %v432_v33 = vadd.f32 -1.4531521, %v416_v16  ;;  %v444_v5 = vmul.f32 %v428_v11, %v1273_v38  ;;  %v433_v15 = vadd.f32 -1.4531521, %v417_v62 }
  0xf0   : > { %v434_v3 = vadd.f32 -1.4531521, %v418_v36  ;;  %v435_v41 = vadd.f32 -1.4531521, %v419_v2  ;;  %v445_v43 = vmul.f32 %v429_v34, %v1283_v1  ;;  %v436_v8 = vadd.f32 -1.4531521, %v420_v44 }
  0xf1   : > { %v437_v47 = vadd.f32 -1.4531521, %v421_v4  ;;  %v438_v61 = vadd.f32 -1.4531521, %v422_v59  ;;  %v439_v24 = vadd.f32 -1.4531521, %v423_v25  ;;  %v446_v9 = vmul.f32 %v430_v48, %v1286_v45 }
  0xf2   : > { %v440_v58 = vadd.f32 -1.4531521, %v424_v40  ;;  %v441_v37 = vadd.f32 -1.4531521, %v425_v13  ;;  %v458_v16 = vadd.f32 1.4214138, %v442_v39  ;;  %v447_v57 = vmul.f32 %v431_v55, %v1291_v51 }
  0xf3   : > { %v459_v23 = vadd.f32 1.4214138, %v443_v35  ;;  %v460_v0 = vadd.f32 1.4214138, %v444_v5  ;;  %v448_v11 = vmul.f32 %v432_v33, %v1294_v14  ;;  %v449_v62 = vmul.f32 %v433_v15, %v1296_v6 }
  0xf4   : > { %v461_v36 = vadd.f32 1.4214138, %v445_v43  ;;  %v450_v2 = vmul.f32 %v434_v3, %v1299_v7  ;;  %v451_v44 = vmul.f32 %v435_v41, %v1301_v50  ;;  %v452_v4 = vmul.f32 %v436_v8, %v1310_v52 }
  0xf5   : > { %v453_v34 = vmul.f32 %v437_v47, %v1312_v46  ;;  %v454_v59 = vmul.f32 %v438_v61, %v1315_v19  ;;  %v455_v25 = vmul.f32 %v439_v24, %v1317_v49  ;;  %v456_v48 = vmul.f32 %v440_v58, %v1321_v30 }
  0xf6   : > { %v462_v40 = vadd.f32 1.4214138, %v446_v9  ;;  %v457_v13 = vmul.f32 %v441_v37, %v1323_v29  ;;  %v474_v55 = vmul.f32 %v458_v16, %v1259_v27  ;;  %v475_v43 = vmul.f32 %v459_v23, %v1271_v53 }
  0xf7   : > { %v476_v33 = vmul.f32 %v460_v0, %v1273_v38  ;;  %v463_v39 = vadd.f32 1.4214138, %v447_v57  ;;  %v464_v35 = vadd.f32 1.4214138, %v448_v11  ;;  %v465_v8 = vadd.f32 1.4214138, %v449_v62 }
  0xf8   : > { %v477_v47 = vmul.f32 %v461_v36, %v1283_v1  ;;  %v466_v5 = vadd.f32 1.4214138, %v450_v2  ;;  %v467_v15 = vadd.f32 1.4214138, %v451_v44  ;;  %v468_v3 = vadd.f32 1.4214138, %v452_v4 }
  0xf9   : > { %v469_v24 = vadd.f32 1.4214138, %v453_v34  ;;  %v470_v58 = vadd.f32 1.4214138, %v454_v59  ;;  %v471_v41 = vadd.f32 1.4214138, %v455_v25  ;;  %v478_v37 = vmul.f32 %v462_v40, %v1286_v45 }
  0xfa   : > { %v490_v61 = vadd.f32 -0.28449672, %v474_v55  ;;  %v491_v9 = vadd.f32 -0.28449672, %v475_v43  ;;  %v492_v23 = vadd.f32 -0.28449672, %v476_v33  ;;  %907 = vpow2.f32 %v1234_v56 }
  0xfb   : > { %v472_v16 = vadd.f32 1.4214138, %v456_v48  ;;  %v473_v0 = vadd.f32 1.4214138, %v457_v13  ;;  %v493_v57 = vadd.f32 -0.28449672, %v477_v47  ;;  %v479_v11 = vmul.f32 %v463_v39, %v1291_v51 }
  0xfc   : > { %v480_v62 = vmul.f32 %v464_v35, %v1294_v14  ;;  %v481_v10 = vmul.f32 %v465_v8, %v1296_v6  ;;  %v482_v36 = vmul.f32 %v466_v5, %v1299_v7  ;;  %v483_v2 = vmul.f32 %v467_v15, %v1301_v50  ;;  %v904_v15 = vpop.eup %903 }
  0xfd   : > { %v484_v44 = vmul.f32 %v468_v3, %v1310_v52  ;;  %v485_v4 = vmul.f32 %v469_v24, %v1312_v46  ;;  %v494_v12 = vadd.f32 -0.28449672, %v478_v37  ;;  %v486_v34 = vmul.f32 %v470_v58, %v1315_v19 }
  0xfe   : > { %v506_v59 = vmul.f32 %v490_v61, %v1259_v27  ;;  %v507_v56 = vmul.f32 %v491_v9, %v1271_v53  ;;  %v508_v25 = vmul.f32 %v492_v23, %v1273_v38  ;;  %v487_v48 = vmul.f32 %v471_v41, %v1317_v49  ;;  %v906_v9 = vpop.eup %905 }
  0xff   : > { %v488_v40 = vmul.f32 %v472_v16, %v1321_v30  ;;  %v489_v13 = vmul.f32 %v473_v0, %v1323_v29  ;;  %v509_v55 = vmul.f32 %v493_v57, %v1283_v1  ;;  %v495_v43 = vadd.f32 -0.28449672, %v479_v11 }
 0x100   : > { %v496_v33 = vadd.f32 -0.28449672, %v480_v62  ;;  %v497_v39 = vadd.f32 -0.28449672, %v481_v10  ;;  %909 = vpow2.f32 %v1236_v32  ;;  %v498_v35 = vadd.f32 -0.28449672, %v482_v36 }
 0x101   : > { %v499_v8 = vadd.f32 -0.28449672, %v483_v2  ;;  %v500_v47 = vadd.f32 -0.28449672, %v484_v44  ;;  %v510_v5 = vmul.f32 %v494_v12, %v1286_v45  ;;  %v522_v3 = vadd.f32 0.2548296, %v506_v59 }
 0x102   : > { %v523_v24 = vadd.f32 0.2548296, %v507_v56  ;;  %v524_v58 = vadd.f32 0.2548296, %v508_v25  ;;  %911 = vpow2.f32 %v1240_v31  ;;  %v501_v41 = vadd.f32 -0.28449672, %v485_v4 }
 0x103   : > { %v502_v37 = vadd.f32 -0.28449672, %v486_v34  ;;  %v525_v61 = vadd.f32 0.2548296, %v509_v55  ;;  %v503_v23 = vadd.f32 -0.28449672, %v487_v48  ;;  %v511_v32 = vmul.f32 %v495_v43, %v1291_v51 }
 0x104   : > { %v504_v16 = vadd.f32 -0.28449672, %v488_v40  ;;  %v505_v0 = vadd.f32 -0.28449672, %v489_v13  ;;  %v908_v57 = vpop.eup %907  ;;  %v512_v11 = vmul.f32 %v496_v33, %v1294_v14  ;;  %v513_v62 = vmul.f32 %v497_v39, %v1296_v6 }
 0x105   : > { %v514_v10 = vmul.f32 %v498_v35, %v1299_v7  ;;  %v526_v36 = vadd.f32 0.2548296, %v510_v5  ;;  %v515_v2 = vmul.f32 %v499_v8, %v1301_v50  ;;  %v538_v31 = vmul.f32 %v522_v3, %v1259_v27 }
 0x106   : > { %v539_v44 = vmul.f32 %v523_v24, %v1271_v53  ;;  %v540_v4 = vmul.f32 %v524_v58, %v1273_v38  ;;  %v516_v12 = vmul.f32 %v500_v47, %v1310_v52  ;;  %v517_v34 = vmul.f32 %v501_v41, %v1312_v46 }
 0x107   : > { %v518_v59 = vmul.f32 %v502_v37, %v1315_v19  ;;  %v541_v56 = vmul.f32 %v525_v61, %v1283_v1  ;;  %v519_v25 = vmul.f32 %v503_v23, %v1317_v49  ;;  %v520_v48 = vmul.f32 %v504_v16, %v1321_v30  ;;  %v1548_v16 = vld [vmem:[#allocation30_spill] sm:$0xff] }
 0x108   : > { %v1390_v40 = vmul.f32 %v505_v0, %v1323_v29  ;;  %v527_v27 = vadd.f32 0.2548296, %v511_v32  ;;  %v528_v13 = vadd.f32 0.2548296, %v512_v11  ;;  %v529_v53 = vadd.f32 0.2548296, %v513_v62 }
 0x109   : > { %v530_v55 = vadd.f32 0.2548296, %v514_v10  ;;  %v542_v38 = vmul.f32 %v526_v36, %v1286_v45  ;;  %913 = vpow2.f32 %v1244_v42  ;;  %v618_v33 = vmul.f32 %v904_v15, %v538_v31  ;;  %v1551_v11 = vld [vmem:[#allocation32_spill] sm:$0xff]  ;;  %v1553_v62 = vld [vmem:[#allocation5_spill] sm:$0xff]  ;;  %v1554_v36 = vld [vmem:[#allocation6_spill] sm:$0xff] }
 0x10a   : > { %v910_v43 = vpop.eup %909  ;;  %v619_v39 = vmul.f32 %v906_v9, %v539_v44  ;;  %v620_v35 = vmul.f32 %v908_v57, %v540_v4  ;;  %vm280_vm14 = vcmp.lt.f32.partialorder %v1099_v17, 0.0  ;;  %v531_v1 = vadd.f32 0.2548296, %v515_v2  ;;  %v1547_v9 = vld [vmem:[#allocation20_spill] sm:$0xff]  ;;  %v1549_v57 = vld [vmem:[#allocation31_spill] sm:$0xff]  ;;  %v1555_v44 = vld [vmem:[#allocation33_spill] sm:$0xff] }
 0x10b   : > { %v532_v8 = vadd.f32 0.2548296, %v516_v12  ;;  %915 = vpow2.f32 %v1246_v63  ;;  %v621_v47 = vmul.f32 %v910_v43, %v541_v56  ;;  %vm281_vm15 = vcmp.lt.f32.partialorder %v1102_v18, 0.0 }
 0x10c   : > { %v912_v5 = vpop.eup %911  ;;  %917 = vpow2.f32 %v1252_v54  ;;  %v634_v3 = vsub.f32 1.0, %v618_v33  ;;  %v635_v45 = vsub.f32 1.0, %v619_v39  ;;  %v636_v24 = vsub.f32 1.0, %v620_v35 }
 0x10d   : > { %v533_v58 = vadd.f32 0.2548296, %v517_v34  ;;  %919 = vpow2.f32 %v1254_v28  ;;  %v622_v42 = vmul.f32 %v912_v5, %v542_v38  ;;  %v637_v15 = vsub.f32 1.0, %v621_v47  ;;  %v1557_v38 = vld [vmem:[#allocation34_spill] sm:$0xff] }
 0x10e   : > { %921 = vpow2.f32 %v1256_v60  ;;  %v650_v41 = vmul.f32 %v634_v3, %v1105_v20  ;;  %v651_v63 = vmul.f32 %v635_v45, %v1108_v21  ;;  %v652_v37 = vmul.f32 %v636_v24, %v1111_v22  ;;  %v1550_v20 = vld [vmem:[#allocation21_spill] sm:$0xff] }
 0x10f   : > { %v543_v61 = vmul.f32 %v527_v27, %v1291_v51  ;;  %923 = vpow2.f32 %v1261_v26  ;;  %v638_v54 = vsub.f32 1.0, %v622_v42  ;;  %v653_v23 = vmul.f32 %v637_v15, %v1547_v9  ;;  %v1552_v51 = vld [vmem:[#allocation4_spill] sm:$0xff]  ;;  %v1561_v9 = vld [vmem:[#allocation23_spill] sm:$0xff] }
 0x110   : > { %925 = vpow2.f32 %v1548_v16  ;;  %v666_v28 = vadd.f32 1.0, %v650_v41  ;;  %v667_v0 = vadd.f32 1.0, %v651_v63  ;;  %v668_v32 = vadd.f32 1.0, %v652_v37  ;;  %v1560_v37 = vld [vmem:[#allocation22_spill] sm:$0xff] }
 0x111   : > { %v544_v60 = vmul.f32 %v528_v13, %v1294_v14  ;;  %927 = vpow2.f32 %v1549_v57  ;;  %v654_v21 = vmul.f32 %v638_v54, %v1550_v20  ;;  %v669_v22 = vadd.f32 1.0, %v653_v23  ;;  %v1556_v14 = vld [vmem:[#allocation7_spill] sm:$0xff]  ;;  %v1563_v20 = vld [vmem:[#allocation25_spill] sm:$0xff] }
 0x112   : > { %929 = vpow2.f32 %v1551_v11  ;;  %v682_v26 = vmul.f32 %v666_v28, %v1552_v51  ;;  %v683_v10 = vmul.f32 %v667_v0, %v1553_v62  ;;  %v684_v2 = vmul.f32 %v668_v32, %v1554_v36 }
 0x113   : > { %v545_v31 = vmul.f32 %v529_v53, %v1296_v6  ;;  %931 = vpow2.f32 %v1555_v44  ;;  %v670_v4 = vadd.f32 1.0, %v654_v21  ;;  %v685_v12 = vmul.f32 %v669_v22, %v1556_v14  ;;  %v914_v34 = vpop.eup %913  ;;  %v1565_v44 = vld [vmem:[#allocation27_spill] sm:$0xff] }
 0x114   : > { %v534_v56 = vadd.f32 0.2548296, %v518_v59  ;;  %v535_v27 = vadd.f32 0.2548296, %v519_v25  ;;  %v546_v13 = vmul.f32 %v530_v55, %v1299_v7  ;;  %933 = vpow2.f32 %v1557_v38  ;;  %698 = vst [vmem:[%s1420_s4] sm:$0xff] %v682_v26  ;;  %699 = vst [vmem:[%s1420_s4 + $0x8] sm:$0xff] %v683_v10  ;;  %v1558_v25 = vld [vmem:[#allocation8_spill] sm:$0xff] }
 0x115   : > { %700 = vst [vmem:[%s1420_s4 + $0x10] sm:$0xff] %v684_v2  ;;  %v916_v6 = vpop.eup %915  ;;  %v536_v53 = vadd.f32 0.2548296, %v520_v48  ;;  %v547_v43 = vmul.f32 %v531_v1, %v1301_v50  ;;  %v623_v59 = vmul.f32 %v914_v34, %v543_v61  ;;  %v686_v33 = vmul.f32 %v670_v4, %v1558_v25  ;;  %701 = vst [vmem:[%s1420_s4 + $0x18] sm:$0xff] %v685_v12 }
 0x116   : > { %v918_v7 = vpop.eup %917  ;;  %v1559_v55 = vmov 1.0   ;;  %v537_v35 = vadd.f32 0.2548296, %v1390_v40  ;;  %v548_v47 = vmul.f32 %v532_v8, %v1310_v52  ;;  %v624_v5 = vmul.f32 %v916_v6, %v544_v60  ;;  %v1567_v6 = vld [vmem:[#allocation29_spill] sm:$0xff] }
 0x117   : > { %v296_v39 = vsel %vm280_vm14, -1.0, %v1559_v55  ;;  %v920_v3 = vpop.eup %919  ;;  %v297_v48 = vsel %vm281_vm15, -1.0, %v1559_v55  ;;  %v549_v50 = vmul.f32 %v533_v58, %v1312_v46  ;;  %v625_v1 = vmul.f32 %v918_v7, %v545_v31  ;;  %702 = vst [vmem:[%s1420_s4 + $0x20] sm:$0xff] %v686_v33  ;;  %v1569_v7 = vld [vmem:[#allocation35_spill] sm:$0xff] }
 0x118   : > { %v639_v45 = vsub.f32 1.0, %v623_v59  ;;  %v922_v24 = vpop.eup %921  ;;  %v550_v42 = vmul.f32 %v534_v56, %v1315_v19  ;;  %v551_v17 = vmul.f32 %v535_v27, %v1317_v49  ;;  %v626_v15 = vmul.f32 %v920_v3, %v546_v13  ;;  %v1562_v49 = vld [vmem:[#allocation24_spill] sm:$0xff]  ;;  %v1568_v59 = vld [vmem:[#allocation9_spill] sm:$0xff] }
 0x119   : > { %v640_v40 = vsub.f32 1.0, %v624_v5  ;;  %v924_v41 = vpop.eup %923  ;;  %v552_v52 = vmul.f32 %v536_v53, %v1321_v30  ;;  %v627_v8 = vmul.f32 %v922_v24, %v547_v43  ;;  %v641_v63 = vsub.f32 1.0, %v625_v1  ;;  %v1566_v56 = vld [vmem:[#allocation28_spill] sm:$0xff]  ;;  %v1571_v1 = vld [vmem:[#allocation11_spill] sm:$0xff]  ;;  %v1572_v24 = vld [vmem:[#allocation13_spill] sm:$0xff] }
 0x11a   : > { %v655_v18 = vmul.f32 %v639_v45, %v1560_v37  ;;  %v926_v61 = vpop.eup %925  ;;  %v553_v46 = vmul.f32 %v537_v35, %v1323_v29  ;;  %v628_v58 = vmul.f32 %v924_v41, %v548_v47  ;;  %v642_v54 = vsub.f32 1.0, %v626_v15  ;;  %v1564_v29 = vld [vmem:[#allocation26_spill] sm:$0xff] }
 0x11b   : > { %v656_v23 = vmul.f32 %v640_v40, %v1561_v9  ;;  %v928_v16 = vpop.eup %927  ;;  %v629_v19 = vmul.f32 %v926_v61, %v549_v50  ;;  %v643_v28 = vsub.f32 1.0, %v627_v8  ;;  %v657_v0 = vmul.f32 %v641_v63, %v1562_v49  ;;  %v1570_v47 = vld [vmem:[#allocation10_spill] sm:$0xff]  ;;  %v1575_v63 = vld [vmem:[#allocation12_spill] sm:$0xff] }
 0x11c   : > { %v671_v32 = vadd.f32 1.0, %v655_v18  ;;  %v930_v60 = vpop.eup %929  ;;  %v630_v57 = vmul.f32 %v928_v16, %v550_v42  ;;  %v644_v30 = vsub.f32 1.0, %v628_v58  ;;  %v658_v21 = vmul.f32 %v642_v54, %v1563_v20  ;;  %v1573_v40 = vld [vmem:[#allocation14_spill] sm:$0xff]  ;;  %v1576_v18 = vld [vmem:[#allocation16_spill] sm:$0xff] }
 0x11d   : > { %v672_v22 = vadd.f32 1.0, %v656_v23  ;;  %v932_v11 = vpop.eup %931  ;;  %v631_v51 = vmul.f32 %v930_v60, %v551_v17  ;;  %v645_v26 = vsub.f32 1.0, %v629_v19  ;;  %v659_v62 = vmul.f32 %v643_v28, %v1564_v29  ;;  %v1579_v23 = vld [vmem:[#allocation18_spill] sm:$0xff]  ;;  %v736_v49 = vld [vmem:[%s1420_s4] sm:$0xff] (%p1006_p5)  ;;  %v742_v60 = vld [vmem:[%s1420_s4 + $0x18] sm:$0xff] (%p1006_p5) }
 0x11e   : > { %v673_v10 = vadd.f32 1.0, %v657_v0  ;;  %v934_v36 = vpop.eup %933  ;;  %v632_v2 = vmul.f32 %v932_v11, %v552_v52  ;;  %v646_v31 = vsub.f32 1.0, %v630_v57  ;;  %v660_v4 = vmul.f32 %v644_v30, %v1565_v44  ;;  %v1574_v52 = vld [vmem:[#allocation15_spill] sm:$0xff]  ;;  %v738_v0 = vld [vmem:[%s1420_s4 + $0x8] sm:$0xff] (%p1006_p5)  ;;  %v744_v57 = vld [vmem:[%s1420_s4 + $0x20] sm:$0xff] (%p1006_p5)  ;;  %737 = vst [vmem:[%s723_s8] sm:$0xff] (%p1006_p5), %v736_v49 }
 0x11f   : > { %v674_v14 = vadd.f32 1.0, %v658_v21  ;;  %v633_v12 = vmul.f32 %v934_v36, %v553_v46  ;;  %v647_v34 = vsub.f32 1.0, %v631_v51  ;;  %v661_v27 = vmul.f32 %v645_v26, %v1566_v56  ;;  %v1577_v46 = vld [vmem:[#allocation17_spill] sm:$0xff]  ;;  %739 = vst [vmem:[%s723_s8 + $0x8] sm:$0xff] (%p1006_p5), %v738_v0  ;;  %743 = vst [vmem:[%s723_s8 + $0x18] sm:$0xff] (%p1006_p5), %v742_v60 }
 0x120   : > { %v675_v13 = vadd.f32 1.0, %v659_v62  ;;  %v648_v38 = vsub.f32 1.0, %v632_v2  ;;  %v662_v53 = vmul.f32 %v646_v31, %v1567_v6  ;;  %v676_v43 = vadd.f32 1.0, %v660_v4  ;;  %745 = vst [vmem:[%s723_s8 + $0x20] sm:$0xff] (%p1006_p5), %v744_v57 }
 0x121   : > { %v687_v25 = vmul.f32 %v671_v32, %v1568_v59  ;;  %v649_v33 = vsub.f32 1.0, %v633_v12  ;;  %v663_v55 = vmul.f32 %v647_v34, %v1569_v7  ;;  %v677_v35 = vadd.f32 1.0, %v661_v27  ;;  %v740_v32 = vld [vmem:[%s1420_s4 + $0x10] sm:$0xff] (%p1006_p5) }
 0x122   : > { %v688_v5 = vmul.f32 %v672_v22, %v1570_v47  ;;  %v664_v3 = vmul.f32 %v648_v38, %v296_v39  ;;  %v678_v50 = vadd.f32 1.0, %v662_v53  ;;  %v689_v45 = vmul.f32 %v673_v10, %v1571_v1  ;;  %741 = vst [vmem:[%s723_s8 + $0x10] sm:$0xff] (%p1006_p5), %v740_v32 }
 0x123   : > { %v690_v42 = vmul.f32 %v674_v14, %v1572_v24  ;;  %703 = vst [vmem:[%s1420_s4 + $0x28] sm:$0xff] %v687_v25  ;;  %v665_v17 = vmul.f32 %v649_v33, %v297_v48  ;;  %v679_v15 = vadd.f32 1.0, %v663_v55  ;;  %v691_v41 = vmul.f32 %v675_v13, %v1573_v40  ;;  %v1578_v48 = vld [vmem:[#allocation19_spill] sm:$0xff]  ;;  %720 = sbr.rel (!%p1006_p5) target bundleno = 306 (0x132), region = 55 }
 0x124   : > { %v692_v8 = vmul.f32 %v676_v43, %v1574_v52  ;;  %704 = vst [vmem:[%s1420_s4 + $0x30] sm:$0xff] %v688_v5  ;;  %v248_v39 = vmul.f32 0.5, %v1575_v63  ;;  %v680_v37 = vadd.f32 1.0, %v664_v3  ;;  %v693_v61 = vmul.f32 %v677_v35, %v1576_v18  ;;  %705 = vst [vmem:[%s1420_s4 + $0x38] sm:$0xff] %v689_v45 }
 0x125   : > { %v694_v58 = vmul.f32 %v678_v50, %v1577_v46  ;;  %706 = vst [vmem:[%s1420_s4 + $0x40] sm:$0xff] %v690_v42  ;;  %v249_v54 = vmul.f32 0.5, %v1578_v48  ;;  %v681_v9 = vadd.f32 1.0, %v665_v17  ;;  %v695_v16 = vmul.f32 %v679_v15, %v1579_v23  ;;  %707 = vst [vmem:[%s1420_s4 + $0x48] sm:$0xff] %v691_v41 }
 0x126   : > { %708 = vst [vmem:[%s1420_s4 + $0x50] sm:$0xff] %v692_v8  ;;  %v696_v19 = vmul.f32 %v680_v37, %v248_v39  ;;  %709 = vst [vmem:[%s1420_s4 + $0x58] sm:$0xff] %v693_v61 }
 0x127   : > { %710 = vst [vmem:[%s1420_s4 + $0x60] sm:$0xff] %v694_v58  ;;  %v697_v28 = vmul.f32 %v681_v9, %v249_v54  ;;  %711 = vst [vmem:[%s1420_s4 + $0x68] sm:$0xff] %v695_v16 }
 0x128   : > { %712 = vst [vmem:[%s1420_s4 + $0x70] sm:$0xff] %v696_v19 }
 0x129   : > { %713 = vst [vmem:[%s1420_s4 + $0x78] sm:$0xff] %v697_v28 }
 0x12a   : > { %v746_v30 = vld [vmem:[%s1420_s4 + $0x28] sm:$0xff] }
 0x12b   : > { %747 = vst [vmem:[%s723_s8 + $0x28] sm:$0xff] %v746_v30  ;;  %v748_v20 = vld [vmem:[%s1420_s4 + $0x30] sm:$0xff]  ;;  %v750_v21 = vld [vmem:[%s1420_s4 + $0x38] sm:$0xff] }
 0x12c   : > { %v752_v22 = vld [vmem:[%s1420_s4 + $0x40] sm:$0xff]  ;;  %749 = vst [vmem:[%s723_s8 + $0x30] sm:$0xff] %v748_v20  ;;  %751 = vst [vmem:[%s723_s8 + $0x38] sm:$0xff] %v750_v21  ;;  %v754_v11 = vld [vmem:[%s1420_s4 + $0x48] sm:$0xff] }
 0x12d   : > { %753 = vst [vmem:[%s723_s8 + $0x80] sm:$0xff] %v752_v22  ;;  %v756_v51 = vld [vmem:[%s1420_s4 + $0x50] sm:$0xff]  ;;  %v758_v26 = vld [vmem:[%s1420_s4 + $0x58] sm:$0xff]  ;;  %755 = vst [vmem:[%s723_s8 + $0x88] sm:$0xff] %v754_v11 }
 0x12e   : > { %757 = vst [vmem:[%s723_s8 + $0x90] sm:$0xff] %v756_v51  ;;  %759 = vst [vmem:[%s723_s8 + $0x98] sm:$0xff] %v758_v26  ;;  %v760_v29 = vld [vmem:[%s1420_s4 + $0x60] sm:$0xff]  ;;  %v762_v62 = vld [vmem:[%s1420_s4 + $0x68] sm:$0xff] }
 0x12f   : > { %v764_v10 = vld [vmem:[%s1420_s4 + $0x70] sm:$0xff]  ;;  %761 = vst [vmem:[%s723_s8 + $0xa0] sm:$0xff] %v760_v29  ;;  %763 = vst [vmem:[%s723_s8 + $0xa8] sm:$0xff] %v762_v62 }
 0x130   : > { %765 = vst [vmem:[%s723_s8 + $0xb0] sm:$0xff] %v764_v10  ;;  %v766_v36 = vld [vmem:[%s1420_s4 + $0x78] sm:$0xff] }
 0x131   : > { %767 = vst [vmem:[%s723_s8 + $0xb8] sm:$0xff] %v766_v36 }
 0x132 PF: > { %p9_p10 = scmp.ge.s32.totalorder %s993_s13, 4   ;;  %s1580_s9 = smov %s953_s10 }
 0x133   : > { %s1581_s10 = smov %s1004_s16  ;;  %s1582_s11 = smov %s993_s13 }
 0x134   :  { %11 = sbr.rel (!%p9_p10) target bundleno = 2 (0x2), region = 109 }

</bundles_post_ra>
